<compile_context>
chip_gen: v5e
topology: v5e:2x2
jax: 0.10.0
libtpu: 0.0.40
codegen_flags: <defaults>
</compile_context>

<pallas_src>
import jax
import jax.numpy as jnp
from jax.experimental import pallas as pl
from jax.experimental.pallas import tpu as pltpu

HEADS = 3
DIM_HEAD = 16
INNER = HEADS * DIM_HEAD            # 48
NORM_EPS = 1e-12                    # torch.nn.functional.normalize default eps


def spectral_attn_kernel(x_ref,        # (TB, C, N)   NCHW-native, tokens on lanes
                         wqkv_ref,     # (3*INNER, C) rows = [Wq; Wk; Wv]
                         rescale_ref,  # (HEADS, 1, 1)
                         wp_ref,       # (C, INNER)   original PyTorch proj layout
                         bp_ref,       # (C, 1)
                         o_ref,        # (TB, C, N)
                         attn_ref):    # (TB, HEADS, DIM_HEAD, DIM_HEAD)
    # Shared weights: load once, reused by every batch element in this step.
    wqkv = wqkv_ref[...].astype(jnp.float32)
    wp = wp_ref[...].astype(jnp.float32)
    bp = bp_ref[...].astype(jnp.float32)
    rescale = rescale_ref[...].astype(jnp.float32)            # (HEADS, 1, 1)

    tb = x_ref.shape[0]
    for b in range(tb):                                       # static unroll (TB is tiny)
        x_cn = x_ref[b].astype(jnp.float32)                   # (C, N)

        # --- Fused q/k/v projection: one MXU matmul -> (3*INNER, N) ---
        qkv = jnp.dot(wqkv, x_cn, preferred_element_type=jnp.float32)

        # --- L2-normalize q and k rows over tokens (lane axis) ---
        qk = qkv[:2 * INNER, :]                               # (96, N)
        ss = jnp.sum(qk * qk, axis=-1, keepdims=True)
        qk = qk * jax.lax.rsqrt(jnp.maximum(ss, NORM_EPS * NORM_EPS))

        q_h = qk[:INNER, :].reshape(HEADS, DIM_HEAD, -1)      # (H, D, N)
        k_h = qk[INNER:, :].reshape(HEADS, DIM_HEAD, -1)      # (H, D, N)
        v_h = qkv[2 * INNER:, :].reshape(HEADS, DIM_HEAD, -1)  # (H, D, N)

        # --- scores[h] = k[h] @ q[h]^T  (contract tokens; RHS transpose folded) ---
        scores = jax.lax.dot_general(
            k_h, q_h, (((2,), (2,)), ((0,), (0,))),
            preferred_element_type=jnp.float32)               # (H, D, D)
        scores = scores * rescale                             # learned per-head rescale

        # --- softmax over last D (lane axis) ---
        scores = scores - jnp.max(scores, axis=-1, keepdims=True)
        p = jnp.exp(scores)
        attn = p * pl.reciprocal(jnp.sum(p, axis=-1, keepdims=True), approx=True)

        # --- out[h] = attn[h] @ v[h] -> (H, D, N) ---
        out_h = jax.lax.dot_general(
            attn, v_h, (((2,), (1,)), ((0,), (0,))),
            preferred_element_type=jnp.float32)

        # --- head-merge + proj as ONE matmul: [C, INNER] @ [INNER, N] + bias ---
        merged = out_h.reshape(INNER, -1)                     # (48, N), head-major rows
        out_cn = jnp.dot(wp, merged, preferred_element_type=jnp.float32) + bp

        o_ref[b] = out_cn.astype(o_ref.dtype)                 # lane-dense (N mult. of 128)
        attn_ref[b] = attn.astype(attn_ref.dtype)


def _grid_steps(batch):
    """One fused step on single-TC chips (v5e/v6e); 2-way batch split on v7x."""
    try:
        kind = jax.devices()[0].device_kind.lower()
    except Exception:
        kind = ""
    n_cores = 2 if "v7" in kind else 1
    if n_cores > 1 and batch % n_cores == 0:
        return n_cores
    return 1


def spectral_attention_forward(x_nchw, params, *, grid_steps=None):
    wq, wk, wv, rescale, wp, bp = params
    B, C, H, W = x_nchw.shape
    N = H * W

    if grid_steps is None:
        grid_steps = _grid_steps(B)
    assert B % grid_steps == 0
    TB = B // grid_steps

    # Host-side packing: pure concatenation / reshapes of PyTorch layouts;
    # the kernel never transposes a weight.
    wqkv = jnp.concatenate([wq, wk, wv], axis=0)              # (3*INNER, C)
    bp_c = bp.reshape(C, 1)
    rescale_f = rescale.astype(jnp.float32)                   # (HEADS, 1, 1)
    x_cn = x_nchw.reshape(B, C, N)                            # NCHW-native, no transpose

    out_cn, attn = pl.pallas_call(
        spectral_attn_kernel,
        out_shape=(
            jax.ShapeDtypeStruct((B, C, N), x_nchw.dtype),
            jax.ShapeDtypeStruct((B, HEADS, DIM_HEAD, DIM_HEAD), jnp.float32),
        ),
        grid_spec=pltpu.PrefetchScalarGridSpec(
            num_scalar_prefetch=0,
            grid=(grid_steps,),
            in_specs=[
                pl.BlockSpec((TB, C, N), lambda s: (s, 0, 0)),               # x
                pl.BlockSpec((3 * INNER, C), lambda s: (0, 0)),              # Wqkv (fused)
                pl.BlockSpec((HEADS, 1, 1), lambda s: (0, 0, 0)),            # rescale
                pl.BlockSpec((C, INNER), lambda s: (0, 0)),                  # Wproj
                pl.BlockSpec((C, 1), lambda s: (0, 0)),                      # bproj
            ],
            out_specs=[
                pl.BlockSpec((TB, C, N), lambda s: (s, 0, 0)),
                pl.BlockSpec((TB, HEADS, DIM_HEAD, DIM_HEAD),
                             lambda s: (s, 0, 0, 0)),
            ],
        ),
        compiler_params=pltpu.CompilerParams(
            dimension_semantics=("parallel",)),
    )(x_cn, wqkv, rescale_f, wp, bp_c)

    return out_cn.reshape(B, C, H, W), attn


def spectral_attention_ref(x_nchw, params):
    """Pure-JAX mirror of the PyTorch forward (for validation)."""
    wq, wk, wv, rescale, wp, bp = params
    B, C, H, W = x_nchw.shape
    N = H * W
    x = jnp.transpose(x_nchw, (0, 2, 3, 1)).reshape(B, N, C)

    def heads_t(t):   # b n (h d) -> b h d n
        return jnp.transpose(t.reshape(B, N, HEADS, DIM_HEAD), (0, 2, 3, 1))

    q = heads_t(x @ wq.T)
    k = heads_t(x @ wk.T)
    v = heads_t(x @ wv.T)

    def l2n(t):
        return t / jnp.maximum(jnp.linalg.norm(t, axis=-1, keepdims=True), NORM_EPS)

    q, k = l2n(q), l2n(k)
    attn = jnp.einsum('bhdn,bhen->bhde', k, q) * rescale[None]
    attn = jax.nn.softmax(attn, axis=-1)
    xo = jnp.einsum('bhde,bhen->bhdn', attn, v)
    xo = jnp.transpose(xo, (0, 3, 1, 2)).reshape(B, N, INNER)
    out = xo @ wp.T + bp
    return out.reshape(B, H, W, C).transpose(0, 3, 1, 2), attn


def make_params(key, dim):
    ks = jax.random.split(key, 6)

    def unif(k, shape, bound):
        return jax.random.uniform(k, shape, jnp.float32, -bound, bound)

    bq = 1.0 / (dim ** 0.5)          # nn.Linear default init scale
    wq = unif(ks[0], (INNER, dim), bq)
    wk = unif(ks[1], (INNER, dim), bq)
    wv = unif(ks[2], (INNER, dim), bq)
    # rescale is ones(heads,1,1) in the module; perturb it so the test exercises it.
    rescale = 1.0 + 0.25 * jax.random.normal(ks[3], (HEADS, 1, 1), jnp.float32)
    bp_ = 1.0 / (INNER ** 0.5)
    wp = unif(ks[4], (dim, INNER), bp_)
    bp = unif(ks[5], (dim,), bp_)
    return wq, wk, wv, rescale, wp, bp


if __name__ == "__main__":
    key = jax.random.PRNGKey(0)
    k_x, k_p = jax.random.split(key)

    B, C, H, W = 2, 32, 16, 16       # dim = C = 32, heads = 3, dim_head = 16
    x = jax.random.normal(k_x, (B, C, H, W), jnp.float32)
    params = make_params(k_p, C)

    out, attn = spectral_attention_forward(x, params)
    jax.block_until_ready((out, attn))
    assert out.shape == (B, C, H, W), out.shape
    assert attn.shape == (B, HEADS, DIM_HEAD, DIM_HEAD), attn.shape

    out_ref, attn_ref = spectral_attention_ref(x, params)
    assert jnp.allclose(out, out_ref, atol=1e-2, rtol=1e-2)
    assert jnp.allclose(attn, attn_ref, atol=1e-2, rtol=1e-2)

    print("KERNEL_OK")
</pallas_src>

<mosaic_0001>
module attributes {stable_mosaic.version = 11 : i64} {
  func.func @spectral_attn_kernel(%arg0: i32, %arg1: memref<2x32x256xf32, #tpu.memory_space<vmem>>, %arg2: memref<144x32xf32, #tpu.memory_space<vmem>>, %arg3: memref<3x1x1xf32, #tpu.memory_space<vmem>>, %arg4: memref<32x48xf32, #tpu.memory_space<vmem>>, %arg5: memref<32x1xf32, #tpu.memory_space<vmem>>, %arg6: memref<2x32x256xf32, #tpu.memory_space<vmem>>, %arg7: memref<2x3x16x16xf32, #tpu.memory_space<vmem>>) attributes {dimension_semantics = [#tpu.dimension_semantics<parallel>], iteration_bounds = array<i64: 1>, scalar_prefetch = 0 : i64, scratch_operands = 0 : i64, tpu.core_type = #tpu.core_type<tc>, window_params = [{transform_indices = @transform_0, window_bounds = array<i64: 2, 32, 256>}, {pipeline_mode = #tpu.pipeline_mode<synchronous>, transform_indices = @transform_1, window_bounds = array<i64: 144, 32>}, {pipeline_mode = #tpu.pipeline_mode<synchronous>, transform_indices = @transform_2, window_bounds = array<i64: 3, 1, 1>}, {pipeline_mode = #tpu.pipeline_mode<synchronous>, transform_indices = @transform_3, window_bounds = array<i64: 32, 48>}, {pipeline_mode = #tpu.pipeline_mode<synchronous>, transform_indices = @transform_4, window_bounds = array<i64: 32, 1>}, {transform_indices = @transform_5, window_bounds = array<i64: 2, 32, 256>}, {transform_indices = @transform_6, window_bounds = array<i64: 2, 3, 16, 16>}]} {
    %c0 = arith.constant 0 : index
    %c0_0 = arith.constant 0 : index
    %0 = vector.load %arg2[%c0, %c0_0] : memref<144x32xf32, #tpu.memory_space<vmem>>, vector<144x32xf32>
    %c0_1 = arith.constant 0 : index
    %c0_2 = arith.constant 0 : index
    %1 = vector.load %arg4[%c0_1, %c0_2] : memref<32x48xf32, #tpu.memory_space<vmem>>, vector<32x48xf32>
    %c0_3 = arith.constant 0 : index
    %c0_4 = arith.constant 0 : index
    %2 = vector.load %arg5[%c0_3, %c0_4] : memref<32x1xf32, #tpu.memory_space<vmem>>, vector<32x1xf32>
    %c0_5 = arith.constant 0 : index
    %c0_6 = arith.constant 0 : index
    %c0_7 = arith.constant 0 : index
    %3 = vector.load %arg3[%c0_5, %c0_6, %c0_7] : memref<3x1x1xf32, #tpu.memory_space<vmem>>, vector<3x1x1xf32>
    %c0_8 = arith.constant 0 : index
    %c0_9 = arith.constant 0 : index
    %c0_10 = arith.constant 0 : index
    %4 = vector.load %arg1[%c0_8, %c0_9, %c0_10] : memref<2x32x256xf32, #tpu.memory_space<vmem>>, vector<1x32x256xf32>
    %5 = vector.shape_cast %4 : vector<1x32x256xf32> to vector<32x256xf32>
    %cst = arith.constant dense<0.000000e+00> : vector<144x256xf32>
    %6 = tpu.matmul %0, %5, %cst {dimension_numbers = #tpu.dot_dimension_numbers<[1], [0], [0], [1], [0, 0, 1, 1], [], []>} : vector<144x32xf32>, vector<32x256xf32>, vector<144x256xf32> -> vector<144x256xf32>
    %7 = vector.extract_strided_slice %6 {offsets = [0, 0], sizes = [96, 256], strides = [1, 1]} : vector<144x256xf32> to vector<96x256xf32>
    %8 = arith.mulf %7, %7 : vector<96x256xf32>
    %cst_11 = arith.constant dense<0.000000e+00> : vector<96xf32>
    %9 = vector.multi_reduction <add>, %8, %cst_11 [1] : vector<96x256xf32> to vector<96xf32>
    %10 = vector.shape_cast %9 : vector<96xf32> to vector<96x1xf32>
    %cst_12 = arith.constant 1.000000e-24 : f32
    %11 = vector.broadcast %cst_12 : f32 to vector<96x1xf32>
    %12 = arith.maximumf %10, %11 : vector<96x1xf32>
    %13 = math.rsqrt %12 : vector<96x1xf32>
    %14 = vector.broadcast %13 : vector<96x1xf32> to vector<96x256xf32>
    %15 = arith.mulf %7, %14 : vector<96x256xf32>
    %16 = vector.extract_strided_slice %15 {offsets = [0, 0], sizes = [48, 256], strides = [1, 1]} : vector<96x256xf32> to vector<48x256xf32>
    %17 = vector.shape_cast %16 : vector<48x256xf32> to vector<3x16x256xf32>
    %18 = vector.extract_strided_slice %15 {offsets = [48, 0], sizes = [48, 256], strides = [1, 1]} : vector<96x256xf32> to vector<48x256xf32>
    %19 = vector.shape_cast %18 : vector<48x256xf32> to vector<3x16x256xf32>
    %20 = vector.extract_strided_slice %6 {offsets = [96, 0], sizes = [48, 256], strides = [1, 1]} : vector<144x256xf32> to vector<48x256xf32>
    %21 = vector.shape_cast %20 : vector<48x256xf32> to vector<3x16x256xf32>
    %cst_13 = arith.constant dense<0.000000e+00> : vector<3x16x16xf32>
    %22 = tpu.matmul %19, %17, %cst_13 {dimension_numbers = #tpu.dot_dimension_numbers<[2], [2], [1], [1], [0, 0, 0, 1, 1, 1], [0], [0]>} : vector<3x16x256xf32>, vector<3x16x256xf32>, vector<3x16x16xf32> -> vector<3x16x16xf32>
    %23 = vector.broadcast %3 : vector<3x1x1xf32> to vector<3x16x16xf32>
    %24 = arith.mulf %22, %23 : vector<3x16x16xf32>
    %cst_14 = arith.constant dense<0xFF800000> : vector<3x16xf32>
    %25 = vector.multi_reduction <maximumf>, %24, %cst_14 [2] : vector<3x16x16xf32> to vector<3x16xf32>
    %26 = vector.shape_cast %25 : vector<3x16xf32> to vector<3x16x1xf32>
    %27 = vector.broadcast %26 : vector<3x16x1xf32> to vector<3x16x16xf32>
    %28 = arith.subf %24, %27 : vector<3x16x16xf32>
    %29 = math.exp %28 : vector<3x16x16xf32>
    %cst_15 = arith.constant dense<0.000000e+00> : vector<3x16xf32>
    %30 = vector.multi_reduction <add>, %29, %cst_15 [2] : vector<3x16x16xf32> to vector<3x16xf32>
    %31 = vector.shape_cast %30 : vector<3x16xf32> to vector<3x16x1xf32>
    %32 = tpu.reciprocal %31 {approx = true} : vector<3x16x1xf32> -> vector<3x16x1xf32>
    %33 = vector.broadcast %32 : vector<3x16x1xf32> to vector<3x16x16xf32>
    %34 = arith.mulf %29, %33 : vector<3x16x16xf32>
    %cst_16 = arith.constant dense<0.000000e+00> : vector<3x16x256xf32>
    %35 = tpu.matmul %34, %21, %cst_16 {dimension_numbers = #tpu.dot_dimension_numbers<[2], [1], [1], [2], [0, 0, 0, 1, 1, 2], [0], [0]>} : vector<3x16x16xf32>, vector<3x16x256xf32>, vector<3x16x256xf32> -> vector<3x16x256xf32>
    %36 = vector.shape_cast %35 : vector<3x16x256xf32> to vector<48x256xf32>
    %cst_17 = arith.constant dense<0.000000e+00> : vector<32x256xf32>
    %37 = tpu.matmul %1, %36, %cst_17 {dimension_numbers = #tpu.dot_dimension_numbers<[1], [0], [0], [1], [0, 0, 1, 1], [], []>} : vector<32x48xf32>, vector<48x256xf32>, vector<32x256xf32> -> vector<32x256xf32>
    %38 = vector.broadcast %2 : vector<32x1xf32> to vector<32x256xf32>
    %39 = arith.addf %37, %38 : vector<32x256xf32>
    %c0_18 = arith.constant 0 : index
    %c0_19 = arith.constant 0 : index
    %c0_20 = arith.constant 0 : index
    %40 = vector.load %arg6[%c0_18, %c0_19, %c0_20] : memref<2x32x256xf32, #tpu.memory_space<vmem>>, vector<1x32x256xf32>
    %41 = vector.shape_cast %40 : vector<1x32x256xf32> to vector<32x256xf32>
    %42 = vector.shape_cast %39 : vector<32x256xf32> to vector<1x32x256xf32>
    tpu.vector_store %arg6[%c0_18, %c0_19, %c0_20], %42 {strides = array<i32>} : memref<2x32x256xf32, #tpu.memory_space<vmem>>, vector<1x32x256xf32>,
    %c0_21 = arith.constant 0 : index
    %c0_22 = arith.constant 0 : index
    %c0_23 = arith.constant 0 : index
    %c0_24 = arith.constant 0 : index
    %43 = vector.load %arg7[%c0_21, %c0_22, %c0_23, %c0_24] : memref<2x3x16x16xf32, #tpu.memory_space<vmem>>, vector<1x3x16x16xf32>
    %44 = vector.shape_cast %43 : vector<1x3x16x16xf32> to vector<3x16x16xf32>
    %45 = vector.shape_cast %34 : vector<3x16x16xf32> to vector<1x3x16x16xf32>
    tpu.vector_store %arg7[%c0_21, %c0_22, %c0_23, %c0_24], %45 {strides = array<i32>} : memref<2x3x16x16xf32, #tpu.memory_space<vmem>>, vector<1x3x16x16xf32>,
    %c1 = arith.constant 1 : index
    %c0_25 = arith.constant 0 : index
    %c0_26 = arith.constant 0 : index
    %46 = vector.load %arg1[%c1, %c0_25, %c0_26] : memref<2x32x256xf32, #tpu.memory_space<vmem>>, vector<1x32x256xf32>
    %47 = vector.shape_cast %46 : vector<1x32x256xf32> to vector<32x256xf32>
    %cst_27 = arith.constant dense<0.000000e+00> : vector<144x256xf32>
    %48 = tpu.matmul %0, %47, %cst_27 {dimension_numbers = #tpu.dot_dimension_numbers<[1], [0], [0], [1], [0, 0, 1, 1], [], []>} : vector<144x32xf32>, vector<32x256xf32>, vector<144x256xf32> -> vector<144x256xf32>
    %49 = vector.extract_strided_slice %48 {offsets = [0, 0], sizes = [96, 256], strides = [1, 1]} : vector<144x256xf32> to vector<96x256xf32>
    %50 = arith.mulf %49, %49 : vector<96x256xf32>
    %cst_28 = arith.constant dense<0.000000e+00> : vector<96xf32>
    %51 = vector.multi_reduction <add>, %50, %cst_28 [1] : vector<96x256xf32> to vector<96xf32>
    %52 = vector.shape_cast %51 : vector<96xf32> to vector<96x1xf32>
    %cst_29 = arith.constant 1.000000e-24 : f32
    %53 = vector.broadcast %cst_29 : f32 to vector<96x1xf32>
    %54 = arith.maximumf %52, %53 : vector<96x1xf32>
    %55 = math.rsqrt %54 : vector<96x1xf32>
    %56 = vector.broadcast %55 : vector<96x1xf32> to vector<96x256xf32>
    %57 = arith.mulf %49, %56 : vector<96x256xf32>
    %58 = vector.extract_strided_slice %57 {offsets = [0, 0], sizes = [48, 256], strides = [1, 1]} : vector<96x256xf32> to vector<48x256xf32>
    %59 = vector.shape_cast %58 : vector<48x256xf32> to vector<3x16x256xf32>
    %60 = vector.extract_strided_slice %57 {offsets = [48, 0], sizes = [48, 256], strides = [1, 1]} : vector<96x256xf32> to vector<48x256xf32>
    %61 = vector.shape_cast %60 : vector<48x256xf32> to vector<3x16x256xf32>
    %62 = vector.extract_strided_slice %48 {offsets = [96, 0], sizes = [48, 256], strides = [1, 1]} : vector<144x256xf32> to vector<48x256xf32>
    %63 = vector.shape_cast %62 : vector<48x256xf32> to vector<3x16x256xf32>
    %cst_30 = arith.constant dense<0.000000e+00> : vector<3x16x16xf32>
    %64 = tpu.matmul %61, %59, %cst_30 {dimension_numbers = #tpu.dot_dimension_numbers<[2], [2], [1], [1], [0, 0, 0, 1, 1, 1], [0], [0]>} : vector<3x16x256xf32>, vector<3x16x256xf32>, vector<3x16x16xf32> -> vector<3x16x16xf32>
    %65 = vector.broadcast %3 : vector<3x1x1xf32> to vector<3x16x16xf32>
    %66 = arith.mulf %64, %65 : vector<3x16x16xf32>
    %cst_31 = arith.constant dense<0xFF800000> : vector<3x16xf32>
    %67 = vector.multi_reduction <maximumf>, %66, %cst_31 [2] : vector<3x16x16xf32> to vector<3x16xf32>
    %68 = vector.shape_cast %67 : vector<3x16xf32> to vector<3x16x1xf32>
    %69 = vector.broadcast %68 : vector<3x16x1xf32> to vector<3x16x16xf32>
    %70 = arith.subf %66, %69 : vector<3x16x16xf32>
    %71 = math.exp %70 : vector<3x16x16xf32>
    %cst_32 = arith.constant dense<0.000000e+00> : vector<3x16xf32>
    %72 = vector.multi_reduction <add>, %71, %cst_32 [2] : vector<3x16x16xf32> to vector<3x16xf32>
    %73 = vector.shape_cast %72 : vector<3x16xf32> to vector<3x16x1xf32>
    %74 = tpu.reciprocal %73 {approx = true} : vector<3x16x1xf32> -> vector<3x16x1xf32>
    %75 = vector.broadcast %74 : vector<3x16x1xf32> to vector<3x16x16xf32>
    %76 = arith.mulf %71, %75 : vector<3x16x16xf32>
    %cst_33 = arith.constant dense<0.000000e+00> : vector<3x16x256xf32>
    %77 = tpu.matmul %76, %63, %cst_33 {dimension_numbers = #tpu.dot_dimension_numbers<[2], [1], [1], [2], [0, 0, 0, 1, 1, 2], [0], [0]>} : vector<3x16x16xf32>, vector<3x16x256xf32>, vector<3x16x256xf32> -> vector<3x16x256xf32>
    %78 = vector.shape_cast %77 : vector<3x16x256xf32> to vector<48x256xf32>
    %cst_34 = arith.constant dense<0.000000e+00> : vector<32x256xf32>
    %79 = tpu.matmul %1, %78, %cst_34 {dimension_numbers = #tpu.dot_dimension_numbers<[1], [0], [0], [1], [0, 0, 1, 1], [], []>} : vector<32x48xf32>, vector<48x256xf32>, vector<32x256xf32> -> vector<32x256xf32>
    %80 = vector.broadcast %2 : vector<32x1xf32> to vector<32x256xf32>
    %81 = arith.addf %79, %80 : vector<32x256xf32>
    %c1_35 = arith.constant 1 : index
    %c0_36 = arith.constant 0 : index
    %c0_37 = arith.constant 0 : index
    %82 = vector.load %arg6[%c1_35, %c0_36, %c0_37] : memref<2x32x256xf32, #tpu.memory_space<vmem>>, vector<1x32x256xf32>
    %83 = vector.shape_cast %82 : vector<1x32x256xf32> to vector<32x256xf32>
    %84 = vector.shape_cast %81 : vector<32x256xf32> to vector<1x32x256xf32>
    tpu.vector_store %arg6[%c1_35, %c0_36, %c0_37], %84 {strides = array<i32>} : memref<2x32x256xf32, #tpu.memory_space<vmem>>, vector<1x32x256xf32>,
    %c1_38 = arith.constant 1 : index
    %c0_39 = arith.constant 0 : index
    %c0_40 = arith.constant 0 : index
    %c0_41 = arith.constant 0 : index
    %85 = vector.load %arg7[%c1_38, %c0_39, %c0_40, %c0_41] : memref<2x3x16x16xf32, #tpu.memory_space<vmem>>, vector<1x3x16x16xf32>
    %86 = vector.shape_cast %85 : vector<1x3x16x16xf32> to vector<3x16x16xf32>
    %87 = vector.shape_cast %76 : vector<3x16x16xf32> to vector<1x3x16x16xf32>
    tpu.vector_store %arg7[%c1_38, %c0_39, %c0_40, %c0_41], %87 {strides = array<i32>} : memref<2x3x16x16xf32, #tpu.memory_space<vmem>>, vector<1x3x16x16xf32>,
    return
  }
  func.func @transform_0(%arg0: i32) -> (i32, i32, i32) {
    %c0_i32 = arith.constant 0 : i32
    %c0_i32_0 = arith.constant 0 : i32
    %c0_i32_1 = arith.constant 0 : i32
    return %arg0, %c0_i32, %c0_i32_0 : i32, i32, i32
  }
  func.func @transform_1(%arg0: i32) -> (i32, i32) {
    %c0_i32 = arith.constant 0 : i32
    %c0_i32_0 = arith.constant 0 : i32
    %c0_i32_1 = arith.constant 0 : i32
    return %c0_i32, %c0_i32_0 : i32, i32
  }
  func.func @transform_2(%arg0: i32) -> (i32, i32, i32) {
    %c0_i32 = arith.constant 0 : i32
    %c0_i32_0 = arith.constant 0 : i32
    %c0_i32_1 = arith.constant 0 : i32
    %c0_i32_2 = arith.constant 0 : i32
    return %c0_i32, %c0_i32_0, %c0_i32_1 : i32, i32, i32
  }
  func.func @transform_3(%arg0: i32) -> (i32, i32) {
    %c0_i32 = arith.constant 0 : i32
    %c0_i32_0 = arith.constant 0 : i32
    %c0_i32_1 = arith.constant 0 : i32
    return %c0_i32, %c0_i32_0 : i32, i32
  }
  func.func @transform_4(%arg0: i32) -> (i32, i32) {
    %c0_i32 = arith.constant 0 : i32
    %c0_i32_0 = arith.constant 0 : i32
    %c0_i32_1 = arith.constant 0 : i32
    return %c0_i32, %c0_i32_0 : i32, i32
  }
  func.func @transform_5(%arg0: i32) -> (i32, i32, i32) {
    %c0_i32 = arith.constant 0 : i32
    %c0_i32_0 = arith.constant 0 : i32
    %c0_i32_1 = arith.constant 0 : i32
    return %arg0, %c0_i32, %c0_i32_0 : i32, i32, i32
  }
  func.func @transform_6(%arg0: i32) -> (i32, i32, i32, i32) {
    %c0_i32 = arith.constant 0 : i32
    %c0_i32_0 = arith.constant 0 : i32
    %c0_i32_1 = arith.constant 0 : i32
    %c0_i32_2 = arith.constant 0 : i32
    return %arg0, %c0_i32, %c0_i32_0, %c0_i32_1 : i32, i32, i32, i32
  }
}

</mosaic_0001>

<bundles_post_ra>
// kernel: tpu_custom_call.1
= control target key start
LH: loop header
LB: loop body
LE: loop exit
PB: predicated region body
PF: predicated region fallthrough
CT: control target
= control target key end

     0   :  { %12 = vsyncpa [#allocation3], 0  ;;  %vm61_vm0 = vcmask 261120   ;;  %s2873_s0 = inlined_call_operand.vmem [shape: f32[2,32,256], index: 0, kind: input, shape index: {}]   ;;  %s2874_s1 = inlined_call_operand.vmem [shape: f32[144,32], index: 1, kind: input, shape index: {}]   ;;  %s2875_s2 = inlined_call_operand.vmem [shape: f32[3,1,1], index: 2, kind: input, shape index: {}]   ;;  %s2876_s3 = inlined_call_operand.vmem [shape: f32[32,48], index: 3, kind: input, shape index: {}]   ;;  %s2877_s4 = inlined_call_operand.vmem [shape: f32[32,1], index: 4, kind: input, shape index: {}]   ;;  %s2878_s5 = inlined_call_operand.hbm [shape: f32[2,32,256], index: 5, kind: output, shape index: {0}]   ;;  %s2879_s6 = inlined_call_operand.hbm [shape: f32[2,3,16,16], index: 6, kind: output, shape index: {1}]  }
   0x1   :  { %v59_v0 = vld [vmem:[%s2873_s0 + $0x30] sm:$0xff]  ;;  %v60_v1 = vld [vmem:[%s2873_s0 + $0x38] sm:$0xff]  ;;  %v57_v2 = vld [vmem:[%s2873_s0 + $0x20] sm:$0xff] }
   0x2   :  { %128 = vmatpush.msra.mxu0 %v59_v0  ;;  %199 = vmatpush.msra.mxu1 %v60_v1  ;;  %v58_v3 = vld [vmem:[%s2873_s0 + $0x28] sm:$0xff]  ;;  %v55_v4 = vld [vmem:[%s2873_s0 + $0x10] sm:$0xff]  ;;  %v56_v5 = vld [vmem:[%s2873_s0 + $0x18] sm:$0xff] }
   0x3   :  { %v53_v6 = vld [vmem:[%s2873_s0] sm:$0xff]  ;;  %v54_v7 = vld [vmem:[%s2873_s0 + $0x8] sm:$0xff] }
   0x4   :  { %129 = vmatpush.msra.mxu0 %v57_v2  ;;  %200 = vmatpush.msra.mxu1 %v58_v3  ;;  %v24_v8 = vld [vmem:[%s2874_s1] sm:$0xff] }
   0x6   :  { %130 = vmatpush.msra.mxu0 %v55_v4  ;;  %201 = vmatpush.msra.mxu1 %v56_v5 }
   0x7   :  { %13 = vsyncpa [#allocation5], 0  ;;  %v25_v9 = vld [vmem:[%s2874_s1 + $0x8] sm:$0xff]  ;;  %v26_v10 = vld [vmem:[%s2874_s1 + $0x10] sm:$0xff]  ;;  %s2105_s16 = smov [#allocation4]   ;;  %s1790_s19 = sshll.u32 %s2879_s6, 4  ;;  %s1791_s19 = int_to_ptr.hbm [resolvable:$true] %s1790_s19 }
   0x8   :  { %131 = vmatpush.msra.mxu0 %v53_v6  ;;  %202 = vmatpush.msra.mxu1 %v54_v7  ;;  %v27_v11 = vld [vmem:[%s2874_s1 + $0x18] sm:$0xff]  ;;  %v28_v12 = vld [vmem:[%s2874_s1 + $0x20] sm:$0xff]  ;;  %v29_v13 = vld [vmem:[%s2874_s1 + $0x28] sm:$0xff]  ;;  %s1788_s17 = sshll.u32 %s2105_s16, 4  ;;  %s2106_s20 = smov 128   ;;  %s1789_s17 = int_to_ptr.vmem [resolvable:$true] %s1788_s17 }
   0x9   :  { %1807 = vmatmul.msk.f32.vlgmr.msra.gmra.mxu0 %vm61_vm0, %v24_v8  ;;  %1825 = vmatmul.msk.f32.vlgmr.msra.gmra.mxu1 %vm61_vm0, %v24_v8  ;;  %v30_v14 = vld [vmem:[%s2874_s1 + $0x30] sm:$0xff]  ;;  %v31_v15 = vld [vmem:[%s2874_s1 + $0x38] sm:$0xff]  ;;  %v32_v16 = vld [vmem:[%s2874_s1 + $0x40] sm:$0xff]  ;;  %s2107_s21 = smov 8   ;;  %s1777_s24 = sshll.u32 %s2878_s5, 4  ;;  %s1778_s24 = int_to_ptr.hbm [resolvable:$true] %s1777_s24 }
   0xa   :  { %v33_v17 = vld [vmem:[%s2874_s1 + $0x48] sm:$0xff]  ;;  %v34_v18 = vld [vmem:[%s2874_s1 + $0x50] sm:$0xff]  ;;  %v35_v19 = vld [vmem:[%s2874_s1 + $0x58] sm:$0xff]  ;;  %s2109_s25 = smov 256   ;;  %s2110_s26 = smov 16  }
  0x11   :  { %1808 = vmatmul.msk.f32.gmra.mxu0 %vm61_vm0, %v25_v9  ;;  %1826 = vmatmul.msk.f32.gmra.mxu1 %vm61_vm0, %v25_v9 }
  0x19   :  { %1809 = vmatmul.msk.f32.gmra.mxu0 %vm61_vm0, %v26_v10  ;;  %1827 = vmatmul.msk.f32.gmra.mxu1 %vm61_vm0, %v26_v10 }
  0x21   :  { %1810 = vmatmul.msk.f32.gmra.mxu0 %vm61_vm0, %v27_v11  ;;  %1828 = vmatmul.msk.f32.gmra.mxu1 %vm61_vm0, %v27_v11 }
  0x29   :  { %1811 = vmatmul.msk.f32.gmra.mxu0 %vm61_vm0, %v28_v12  ;;  %1829 = vmatmul.msk.f32.gmra.mxu1 %vm61_vm0, %v28_v12 }
  0x31   :  { %1812 = vmatmul.msk.f32.gmra.mxu0 %vm61_vm0, %v29_v13  ;;  %1830 = vmatmul.msk.f32.gmra.mxu1 %vm61_vm0, %v29_v13 }
  0x39   :  { %1813 = vmatmul.msk.f32.gmra.mxu0 %vm61_vm0, %v30_v14  ;;  %1831 = vmatmul.msk.f32.gmra.mxu1 %vm61_vm0, %v30_v14 }
  0x41   :  { %1814 = vmatmul.msk.f32.gmra.mxu0 %vm61_vm0, %v31_v15  ;;  %1832 = vmatmul.msk.f32.gmra.mxu1 %vm61_vm0, %v31_v15 }
  0x49   :  { %1815 = vmatmul.msk.f32.gmra.mxu0 %vm61_vm0, %v32_v16  ;;  %1833 = vmatmul.msk.f32.gmra.mxu1 %vm61_vm0, %v32_v16 }
  0x51   :  { %1816 = vmatmul.msk.f32.gmra.mxu0 %vm61_vm0, %v33_v17  ;;  %1834 = vmatmul.msk.f32.gmra.mxu1 %vm61_vm0, %v33_v17 }
  0x59   :  { %1817 = vmatmul.msk.f32.gmra.mxu0 %vm61_vm0, %v34_v18  ;;  %1835 = vmatmul.msk.f32.gmra.mxu1 %vm61_vm0, %v34_v18 }
  0x61   :  { %1818 = vmatmul.msk.f32.gmra.mxu0 %vm61_vm0, %v35_v19  ;;  %1836 = vmatmul.msk.f32.gmra.mxu1 %vm61_vm0, %v35_v19 }
  0x86   :  { %v2230_v20 = vpop.f32.mrf.mxu0  ;;  %v2232_v21 = vpop.f32.mrf.mxu1 }
  0x87   :  { %v258_v27 = vmul.f32 %v2230_v20, %v2230_v20  ;;  %v259_v28 = vmul.f32 %v2232_v21, %v2232_v21 }
  0x89   :  { %v282_v31 = vadd.f32 %v259_v28, %v258_v27 }
  0x8e   :  { %v2234_v22 = vpop.f32.mrf.mxu0  ;;  %v2236_v23 = vpop.f32.mrf.mxu1 }
  0x8f   :  { %v260_v24 = vmul.f32 %v2234_v22, %v2234_v22  ;;  %v261_v25 = vmul.f32 %v2236_v23, %v2236_v23 }
  0x91   :  { %v285_v26 = vadd.f32 %v261_v25, %v260_v24 }
  0x93   :  { %286 = vadd.xlane.f32.xlu0 %v285_v26 }
  0x96   :  { %v2246_v29 = vpop.f32.mrf.mxu0  ;;  %v2248_v30 = vpop.f32.mrf.mxu1 }
  0x97   :  { %v262_v37 = vmul.f32 %v2246_v29, %v2246_v29  ;;  %v263_v38 = vmul.f32 %v2248_v30, %v2248_v30 }
  0x99   :  { %v288_v41 = vadd.f32 %v263_v38, %v262_v37 }
  0x9b   :  { %283 = vadd.xlane.f32.xlu0 %v282_v31 }
  0x9e   :  { %v2250_v32 = vpop.f32.mrf.mxu0  ;;  %v2252_v33 = vpop.f32.mrf.mxu1 }
  0x9f   :  { %v264_v34 = vmul.f32 %v2250_v32, %v2250_v32  ;;  %v265_v35 = vmul.f32 %v2252_v33, %v2252_v33 }
  0xa1   :  { %v291_v36 = vadd.f32 %v265_v35, %v264_v34 }
  0xa3   :  { %292 = vadd.xlane.f32.xlu2 %v291_v36 }
  0xa6   :  { %v2262_v39 = vpop.f32.mrf.mxu0  ;;  %v2264_v40 = vpop.f32.mrf.mxu1 }
  0xa7   :  { %v266_v62 = vmul.f32 %v2262_v39, %v2262_v39  ;;  %v267_v63 = vmul.f32 %v2264_v40, %v2264_v40 }
  0xa9   :  { %v294_v4 = vadd.f32 %v267_v63, %v266_v62 }
  0xab   :  { %289 = vadd.xlane.f32.xlu2 %v288_v41 }
  0xae   :  { %v2266_v42 = vpop.f32.mrf.mxu0  ;;  %v2268_v43 = vpop.f32.mrf.mxu1 }
  0xaf   :  { %v268_v44 = vmul.f32 %v2266_v42, %v2266_v42  ;;  %v269_v45 = vmul.f32 %v2268_v43, %v2268_v43 }
  0xb1   :  { %v297_v46 = vadd.f32 %v269_v45, %v268_v44 }
  0xb3   :  { %298 = vadd.xlane.f32.xlu2 %v297_v46 }
  0xb6   :  { %v2274_v47 = vpop.f32.mrf.mxu0  ;;  %v2276_v48 = vpop.f32.mrf.mxu1 }
  0xb7   :  { %v270_v49 = vmul.f32 %v2274_v47, %v2274_v47  ;;  %v271_v50 = vmul.f32 %v2276_v48, %v2276_v48 }
  0xb9   :  { %v300_v51 = vadd.f32 %v271_v50, %v270_v49 }
  0xbb   :  { %301 = vadd.xlane.f32.xlu1 %v300_v51 }
  0xbe   :  { %v2282_v52 = vpop.f32.mrf.mxu0  ;;  %v2284_v53 = vpop.f32.mrf.mxu1 }
  0xbf   :  { %v272_v54 = vmul.f32 %v2282_v52, %v2282_v52  ;;  %v273_v55 = vmul.f32 %v2284_v53, %v2284_v53 }
  0xc1   :  { %v303_v56 = vadd.f32 %v273_v55, %v272_v54 }
  0xc3   :  { %304 = vadd.xlane.f32.xlu1 %v303_v56 }
  0xc6   :  { %v2290_v57 = vpop.f32.mrf.mxu0  ;;  %v2292_v58 = vpop.f32.mrf.mxu1 }
  0xc7   :  { %v274_v59 = vmul.f32 %v2290_v57, %v2290_v57  ;;  %v275_v60 = vmul.f32 %v2292_v58, %v2292_v58 }
  0xc9   :  { %v306_v61 = vadd.f32 %v275_v60, %v274_v59 }
  0xcb   :  { %307 = vadd.xlane.f32.xlu0 %v306_v61 }
  0xce   :  { %v2302_v0 = vpop.f32.mrf.mxu0  ;;  %v2304_v1 = vpop.f32.mrf.mxu1 }
  0xcf   :  { %v276_v2 = vmul.f32 %v2302_v0, %v2302_v0  ;;  %v277_v3 = vmul.f32 %v2304_v1, %v2304_v1 }
  0xd1   :  { %v309_v5 = vadd.f32 %v277_v3, %v276_v2 }
  0xd3   :  { %295 = vadd.xlane.f32.xlu0 %v294_v4  ;;  %310 = vadd.xlane.f32.xlu1 %v309_v5 }
  0xd6   :  { %v2310_v6 = vpop.f32.mrf.mxu0  ;;  %v2312_v7 = vpop.f32.mrf.mxu1 }
  0xd7   :  { %v278_v8 = vmul.f32 %v2310_v6, %v2310_v6  ;;  %v279_v9 = vmul.f32 %v2312_v7, %v2312_v7 }
  0xd9   :  { %v312_v10 = vadd.f32 %v279_v9, %v278_v8 }
  0xdb   :  { %313 = vadd.xlane.f32.xlu1 %v312_v10 }
  0xde   :  { %v2318_v11 = vpop.f32.mrf.mxu0  ;;  %v2320_v12 = vpop.f32.mrf.mxu1 }
  0xdf   :  { %v280_v13 = vmul.f32 %v2318_v11, %v2318_v11  ;;  %v281_v14 = vmul.f32 %v2320_v12, %v2320_v12 }
  0xe1   :  { %v315_v15 = vadd.f32 %v281_v14, %v280_v13 }
  0xe3   :  { %316 = vadd.xlane.f32.xlu2 %v315_v15 }
 0x106   :  { %v287_v16 = vpop.xlane.xlu0 %286 }
 0x107   :  { %v319_v17 = vmax.f32 %v287_v16, 1e-24 }
 0x109   :  { %1940 = vrsqrt.f32 %v319_v17  ;;  %vm346_vm2 = vweird.f32 %v319_v17 }
 0x10e   :  { %v284_v18 = vpop.xlane.xlu0 %283 }
 0x10f   :  { %v1941_v19 = vpop.eup %1940  ;;  %v318_v24 = vmax.f32 %v284_v18, 1e-24 }
 0x110   :  { %v341_v25 = vmul.f32 %v1941_v19, %v319_v17  ;;  %vm347_vm1 = vweird.f32 %v1941_v19 }
 0x111   :  { %1942 = vrsqrt.f32 %v318_v24  ;;  %vm348_vm3 = vmor %vm346_vm2, %vm347_vm1  ;;  %vm336_vm5 = vweird.f32 %v318_v24 }
 0x112   :  { %v342_v26 = vmul.f32 %v1941_v19, %v341_v25 }
 0x114   :  { %v343_v27 = vmul.f32 0.5, %v342_v26 }
 0x116   :  { %v293_v28 = vpop.xlane.xlu2 %292  ;;  %v344_v31 = vsub.f32 1.5, %v343_v27 }
 0x117   :  { %v1943_v34 = vpop.eup %1942  ;;  %v321_v35 = vmax.f32 %v293_v28, 1e-24 }
 0x118   :  { %v331_v36 = vmul.f32 %v1943_v34, %v318_v24  ;;  %v345_v37 = vmul.f32 %v1941_v19, %v344_v31  ;;  %vm337_vm4 = vweird.f32 %v1943_v34  ;;  %v1937_v31 = vld [vmem:[%s2875_s2] ss:$0 sm:$0xff] }
 0x119   :  { %1944 = vrsqrt.f32 %v321_v35  ;;  %vm338_vm6 = vmor %vm336_vm5, %vm337_vm4  ;;  %vm366_vm8 = vweird.f32 %v321_v35 }
 0x11a   :  { %v332_v38 = vmul.f32 %v1943_v34, %v331_v36  ;;  %v349_v41 = vsel %vm348_vm3, %v1941_v19, %v345_v37 }
 0x11b   :  { %v452_v44 = vmul.f32 %v349_v41, %v2234_v22  ;;  %v453_v45 = vmul.f32 %v349_v41, %v2236_v23 }
 0x11c   :  { %v333_v46 = vmul.f32 0.5, %v332_v38 }
 0x11d   :  { %488 = vmatpush.xpose.msra.mxu2 %v452_v44  ;;  %511 = vmatpush.xpose.msra.mxu3 %v453_v45 }
 0x11e   :  { %v334_v49 = vsub.f32 1.5, %v333_v46  ;;  %v290_v50 = vpop.xlane.xlu2 %289 }
 0x11f   :  { %v1945_v51 = vpop.eup %1944  ;;  %v320_v54 = vmax.f32 %v290_v50, 1e-24 }
 0x120   :  { %v361_v55 = vmul.f32 %v1945_v51, %v321_v35  ;;  %v335_v56 = vmul.f32 %v1943_v34, %v334_v49  ;;  %vm367_vm7 = vweird.f32 %v1945_v51  ;;  %v2104_v35 = vmov 0  }
 0x121   :  { %1946 = vrsqrt.f32 %v320_v54  ;;  %vm368_vm9 = vmor %vm366_vm8, %vm367_vm7  ;;  %vm356_vm11 = vweird.f32 %v320_v54  ;;  %1934 = vset.pattern.permute.xlu0 %v2104_v35  ;;  %1935 = vset.pattern.permute.xlu1 %v2104_v35 }
 0x122   :  { %v362_v59 = vmul.f32 %v1945_v51, %v361_v55  ;;  %v339_v60 = vsel %vm338_vm6, %v1943_v34, %v335_v56  ;;  %619 = vperm.xlu0 %1934, %v1937_v31   ;;  %1936 = vset.pattern.permute.xlu2 %v2104_v35 }
 0x123   :  { %v450_v61 = vmul.f32 %v339_v60, %v2230_v20  ;;  %v451_v22 = vmul.f32 %v339_v60, %v2232_v21 }
 0x124   :  { %v363_v23 = vmul.f32 0.5, %v362_v59 }
 0x125   :  { %489 = vmatpush.xpose.msra.mxu2 %v450_v61  ;;  %512 = vmatpush.xpose.msra.mxu3 %v451_v22 }
 0x126   :  { %v364_v62 = vsub.f32 1.5, %v363_v23  ;;  %v299_v63 = vpop.xlane.xlu2 %298 }
 0x127   :  { %v1947_v2 = vpop.eup %1946  ;;  %v323_v3 = vmax.f32 %v299_v63, 1e-24  ;;  %v1938_v63 = vld [vmem:[%s2875_s2 + $0x1] ss:$0 sm:$0xff] }
 0x128   :  { %v351_v4 = vmul.f32 %v1947_v2, %v320_v54  ;;  %v365_v5 = vmul.f32 %v1945_v51, %v364_v62  ;;  %vm357_vm10 = vweird.f32 %v1947_v2  ;;  %623 = vperm.xlu1 %1935, %v1938_v63  }
 0x129   :  { %1948 = vrsqrt.f32 %v323_v3  ;;  %vm358_vm12 = vmor %vm356_vm11, %vm357_vm10  ;;  %vm386_vm15 = vweird.f32 %v323_v3 }
 0x12a   :  { %v352_v8 = vmul.f32 %v1947_v2, %v351_v4  ;;  %v369_v9 = vsel %vm368_vm9, %v1945_v51, %v365_v5 }
 0x12b   :  { %v456_v10 = vmul.f32 %v369_v9, %v2250_v32  ;;  %v457_v20 = vmul.f32 %v369_v9, %v2252_v33 }
 0x12c   :  { %v353_v21 = vmul.f32 0.5, %v352_v8 }
 0x12d   :  { %534 = vmatpush.xpose.msrb.mxu2 %v456_v10  ;;  %557 = vmatpush.xpose.msrb.mxu3 %v457_v20 }
 0x12e   :  { %v354_v13 = vsub.f32 1.5, %v353_v21  ;;  %v302_v14 = vpop.xlane.xlu1 %301  ;;  %v1939_v21 = vld [vmem:[%s2875_s2 + $0x2] ss:$0 sm:$0xff] }
 0x12f   :  { %v1949_v15 = vpop.eup %1948  ;;  %v324_v16 = vmax.f32 %v302_v14, 1e-24  ;;  %627 = vperm.xlu2 %1936, %v1939_v21  }
 0x130   :  { %v381_v17 = vmul.f32 %v1949_v15, %v323_v3  ;;  %v355_v18 = vmul.f32 %v1947_v2, %v354_v13  ;;  %vm387_vm13 = vweird.f32 %v1949_v15 }
 0x131   :  { %1950 = vrsqrt.f32 %v324_v16  ;;  %vm388_vm1 = vmor %vm386_vm15, %vm387_vm13  ;;  %vm396_vm2 = vweird.f32 %v324_v16 }
 0x132   :  { %v382_v19 = vmul.f32 %v1949_v15, %v381_v17  ;;  %v359_v24 = vsel %vm358_vm12, %v1947_v2, %v355_v18 }
 0x133   :  { %v454_v25 = vmul.f32 %v359_v24, %v2246_v29  ;;  %v455_v32 = vmul.f32 %v359_v24, %v2248_v30 }
 0x134   :  { %v383_v33 = vmul.f32 0.5, %v382_v19 }
 0x135   :  { %535 = vmatpush.xpose.msrb.mxu2 %v454_v25  ;;  %558 = vmatpush.xpose.msrb.mxu3 %v455_v32 }
 0x136   :  { %v305_v26 = vpop.xlane.xlu1 %304  ;;  %v384_v36 = vsub.f32 1.5, %v383_v33 }
 0x137   :  { %v1951_v27 = vpop.eup %1950  ;;  %v325_v28 = vmax.f32 %v305_v26, 1e-24 }
 0x138   :  { %v391_v34 = vmul.f32 %v1951_v27, %v324_v16  ;;  %v385_v37 = vmul.f32 %v1949_v15, %v384_v36  ;;  %vm397_vm14 = vweird.f32 %v1951_v27 }
 0x139   :  { %1952 = vrsqrt.f32 %v325_v28  ;;  %vm398_vm3 = vmor %vm396_vm2, %vm397_vm14  ;;  %vm406_vm5 = vweird.f32 %v325_v28 }
 0x13a   :  { %v392_v29 = vmul.f32 %v1951_v27, %v391_v34  ;;  %v389_v50 = vsel %vm388_vm1, %v1949_v15, %v385_v37 }
 0x13b   :  { %v460_v60 = vmul.f32 %v389_v50, %v2266_v42  ;;  %v461_v61 = vmul.f32 %v389_v50, %v2268_v43 }
 0x13c   :  { %v393_v30 = vmul.f32 0.5, %v392_v29 }
 0x13e   :  { %v394_v38 = vsub.f32 1.5, %v393_v30  ;;  %v308_v41 = vpop.xlane.xlu0 %307 }
 0x13f   :  { %v1953_v44 = vpop.eup %1952  ;;  %v326_v45 = vmax.f32 %v308_v41, 1e-24 }
 0x140   :  { %v401_v46 = vmul.f32 %v1953_v44, %v325_v28  ;;  %v395_v49 = vmul.f32 %v1951_v27, %v394_v38  ;;  %vm407_vm4 = vweird.f32 %v1953_v44 }
 0x141   :  { %1954 = vrsqrt.f32 %v326_v45  ;;  %vm408_vm6 = vmor %vm406_vm5, %vm407_vm4  ;;  %vm416_vm8 = vweird.f32 %v326_v45 }
 0x142   :  { %v402_v51 = vmul.f32 %v1953_v44, %v401_v46  ;;  %v399_v54 = vsel %vm398_vm3, %v1951_v27, %v395_v49 }
 0x143   :  { %v462_v55 = vmul.f32 %v399_v54, %v2274_v47  ;;  %v463_v56 = vmul.f32 %v399_v54, %v2276_v48 }
 0x144   :  { %v403_v59 = vmul.f32 0.5, %v402_v51 }
 0x145   :  { %490 = vmatmul.f32.vlgmr.msra.gmra.mxu2 %v462_v55  ;;  %513 = vmatmul.f32.vlgmr.msra.gmra.mxu3 %v463_v56 }
 0x146   :  { %v404_v22 = vsub.f32 1.5, %v403_v59  ;;  %580 = vmatpush.xpose.msra.mxu2 %v460_v60  ;;  %603 = vmatpush.xpose.msra.mxu3 %v461_v61  ;;  %v296_v23 = vpop.xlane.xlu0 %295  ;;  %v311_v62 = vpop.xlane.xlu1 %310 }
 0x147   :  { %v1955_v47 = vpop.eup %1954  ;;  %v322_v2 = vmax.f32 %v296_v23, 1e-24  ;;  %v327_v48 = vmax.f32 %v311_v62, 1e-24 }
 0x148   :  { %v411_v3 = vmul.f32 %v1955_v47, %v326_v45  ;;  %v405_v42 = vmul.f32 %v1953_v44, %v404_v22  ;;  %vm417_vm7 = vweird.f32 %v1955_v47 }
 0x149   :  { %1956 = vrsqrt.f32 %v322_v2  ;;  %vm418_vm9 = vmor %vm416_vm8, %vm417_vm7  ;;  %vm376_vm12 = vweird.f32 %v322_v2  ;;  %vm426_vm14 = vweird.f32 %v327_v48  ;;  %vm636_vm7 = vcmask 130048  }
 0x14a   :  { %v412_v43 = vmul.f32 %v1955_v47, %v411_v3  ;;  %1958 = vrsqrt.f32 %v327_v48  ;;  %v409_v4 = vsel %vm408_vm6, %v1953_v44, %v405_v42  ;;  %v2370_v42 = vld [vmem:[%s2874_s1 + $0x60] sm:$0xff]  ;;  %vm879_vm8 = vcmask 392192  }
 0x14b   :  { %v464_v5 = vmul.f32 %v409_v4, %v2282_v52  ;;  %v465_v8 = vmul.f32 %v409_v4, %v2284_v53  ;;  %1819 = vmatmul.msk.f32.gmra.mxu0 %vm61_vm0, %v2370_v42  ;;  %1837 = vmatmul.msk.f32.gmra.mxu1 %vm61_vm0, %v2370_v42 }
 0x14c   :  { %v413_v9 = vmul.f32 0.5, %v412_v43 }
 0x14d   :  { %493 = vmatmul.f32.gmra.mxu2 %v464_v5  ;;  %516 = vmatmul.f32.gmra.mxu3 %v465_v8 }
 0x14e   :  { %v414_v10 = vsub.f32 1.5, %v413_v9  ;;  %v314_v20 = vpop.xlane.xlu1 %313 }
 0x14f   :  { %v1957_v13 = vpop.eup %1956  ;;  %v328_v14 = vmax.f32 %v314_v20, 1e-24 }
 0x150   :  { %v1959_v15 = vpop.eup %1958  ;;  %v371_v16 = vmul.f32 %v1957_v13, %v322_v2  ;;  %v415_v17 = vmul.f32 %v1955_v47, %v414_v10  ;;  %vm377_vm10 = vweird.f32 %v1957_v13  ;;  %v2381_v10 = vld [vmem:[%s2874_s1 + $0x68] sm:$0xff] }
 0x151   :  { %v421_v52 = vmul.f32 %v1959_v15, %v327_v48  ;;  %1960 = vrsqrt.f32 %v328_v14  ;;  %vm427_vm11 = vweird.f32 %v1959_v15  ;;  %vm378_vm13 = vmor %vm376_vm12, %vm377_vm10  ;;  %vm436_vm2 = vweird.f32 %v328_v14 }
 0x152   :  { %v372_v53 = vmul.f32 %v1957_v13, %v371_v16  ;;  %v419_v18 = vsel %vm418_vm9, %v1955_v47, %v415_v17  ;;  %vm428_vm15 = vmor %vm426_vm14, %vm427_vm11 }
 0x153   :  { %v422_v19 = vmul.f32 %v1959_v15, %v421_v52  ;;  %v466_v24 = vmul.f32 %v419_v18, %v2290_v57  ;;  %v467_v25 = vmul.f32 %v419_v18, %v2292_v58  ;;  %1820 = vmatmul.msk.f32.gmra.mxu0 %vm61_vm0, %v2381_v10  ;;  %1838 = vmatmul.msk.f32.gmra.mxu1 %vm61_vm0, %v2381_v10 }
 0x154   :  { %v373_v32 = vmul.f32 0.5, %v372_v53 }
 0x155   :  { %v423_v33 = vmul.f32 0.5, %v422_v19  ;;  %536 = vmatmul.f32.vlgmr.msrb.gmra.mxu2 %v466_v24  ;;  %559 = vmatmul.f32.vlgmr.msrb.gmra.mxu3 %v467_v25 }
 0x156   :  { %v374_v26 = vsub.f32 1.5, %v373_v32  ;;  %v317_v27 = vpop.xlane.xlu2 %316 }
 0x157   :  { %v1961_v28 = vpop.eup %1960  ;;  %v424_v31 = vsub.f32 1.5, %v423_v33  ;;  %v329_v34 = vmax.f32 %v317_v27, 1e-24  ;;  %v2398_v27 = vld [vmem:[%s2874_s1 + $0x70] sm:$0xff] }
 0x158   :  { %v431_v35 = vmul.f32 %v1961_v28, %v328_v14  ;;  %v375_v36 = vmul.f32 %v1957_v13, %v374_v26  ;;  %vm437_vm1 = vweird.f32 %v1961_v28 }
 0x159   :  { %1962 = vrsqrt.f32 %v329_v34  ;;  %v425_v57 = vmul.f32 %v1959_v15, %v424_v31  ;;  %vm438_vm3 = vmor %vm436_vm2, %vm437_vm1  ;;  %vm446_vm5 = vweird.f32 %v329_v34  ;;  %v2416_v31 = vld [vmem:[%s2874_s1 + $0x80] sm:$0xff] }
 0x15a   :  { %v432_v29 = vmul.f32 %v1961_v28, %v431_v35  ;;  %v379_v58 = vsel %vm378_vm13, %v1957_v13, %v375_v36 }
 0x15b   :  { %v429_v30 = vsel %vm428_vm15, %v1959_v15, %v425_v57  ;;  %v458_v37 = vmul.f32 %v379_v58, %v2262_v39  ;;  %v459_v38 = vmul.f32 %v379_v58, %v2264_v40  ;;  %1821 = vmatmul.msk.f32.gmra.mxu0 %vm61_vm0, %v2398_v27  ;;  %1839 = vmatmul.msk.f32.gmra.mxu1 %vm61_vm0, %v2398_v27 }
 0x15c   :  { %v433_v41 = vmul.f32 0.5, %v432_v29  ;;  %v468_v44 = vmul.f32 %v429_v30, %v2302_v0  ;;  %v469_v45 = vmul.f32 %v429_v30, %v2304_v1 }
 0x15d   :  { %581 = vmatpush.xpose.msra.mxu2 %v458_v37  ;;  %604 = vmatpush.xpose.msra.mxu3 %v459_v38 }
 0x15e   :  { %v434_v46 = vsub.f32 1.5, %v433_v41  ;;  %539 = vmatmul.f32.gmra.mxu2 %v468_v44  ;;  %562 = vmatmul.f32.gmra.mxu3 %v469_v45 }
 0x15f   :  { %v1963_v49 = vpop.eup %1962 }
 0x160   :  { %v435_v50 = vmul.f32 %v1961_v28, %v434_v46  ;;  %v441_v51 = vmul.f32 %v1963_v49, %v329_v34  ;;  %vm447_vm4 = vweird.f32 %v1963_v49  ;;  %v2425_v34 = vld [vmem:[%s2874_s1 + $0x88] sm:$0xff] }
 0x161   :  { %vm448_vm6 = vmor %vm446_vm5, %vm447_vm4 }
 0x162   :  { %v439_v54 = vsel %vm438_vm3, %v1961_v28, %v435_v50  ;;  %v442_v39 = vmul.f32 %v1963_v49, %v441_v51  ;;  %v2407_v28 = vld [vmem:[%s2874_s1 + $0x78] sm:$0xff] }
 0x163   :  { %v470_v40 = vmul.f32 %v439_v54, %v2310_v6  ;;  %v471_v55 = vmul.f32 %v439_v54, %v2312_v7  ;;  %1822 = vmatmul.msk.f32.gmra.mxu0 %vm61_vm0, %v2407_v28  ;;  %1840 = vmatmul.msk.f32.gmra.mxu1 %vm61_vm0, %v2407_v28 }
 0x164   :  { %v443_v0 = vmul.f32 0.5, %v442_v39 }
 0x166   :  { %v444_v56 = vsub.f32 1.5, %v443_v0  ;;  %582 = vmatmul.f32.vlgmr.msra.gmra.mxu2 %v470_v40  ;;  %605 = vmatmul.f32.vlgmr.msra.gmra.mxu3 %v471_v55 }
 0x168   :  { %v445_v1 = vmul.f32 %v1963_v49, %v444_v56 }
 0x16a   :  { %v449_v59 = vsel %vm448_vm6, %v1963_v49, %v445_v1 }
 0x16b   :  { %v472_v60 = vmul.f32 %v449_v59, %v2318_v11  ;;  %v473_v61 = vmul.f32 %v449_v59, %v2320_v12  ;;  %1823 = vmatmul.msk.f32.gmra.mxu0 %vm61_vm0, %v2416_v31  ;;  %1841 = vmatmul.msk.f32.gmra.mxu1 %vm61_vm0, %v2416_v31 }
 0x16e   :  { %585 = vmatmul.f32.gmra.mxu2 %v472_v60  ;;  %608 = vmatmul.f32.gmra.mxu3 %v473_v61 }
 0x173   :  { %1824 = vmatmul.msk.f32.gmra.mxu0 %vm61_vm0, %v2425_v34  ;;  %1842 = vmatmul.msk.f32.gmra.mxu1 %vm61_vm0, %v2425_v34 }
 0x189   :  { %v2389_v16 = vpop.permute.xlu2 %627 }
 0x194   :  { %v2359_v22 = vpop.permute.xlu0 %619 }
 0x19a   :  { %v2365_v3 = vpop.permute.xlu1 %623 }
 0x1c8   :  { %v491_v6 = vpop.f32.mrf.mxu2  ;;  %v514_v23 = vpop.f32.mrf.mxu3 }
 0x1c9   :  { %v515_v7 = vadd.f32 %v514_v23, %v491_v6  ;;  %v169_v50 = vpop.f32.mrf.mxu0  ;;  %v240_v51 = vpop.f32.mrf.mxu1 }
 0x1cb   :  { %v630_v62 = vmul.f32 %v2359_v22, %v515_v7 }
 0x1cd   :  { %v637_v63 = vsel %vm636_vm7, %v630_v62, -inf }
 0x1ce   :  { %638 = vmax.xlane.f32.xlu2 %v637_v63 }
 0x1d0   :  { %v494_v47 = vpop.f32.mrf.mxu2  ;;  %v517_v2 = vpop.f32.mrf.mxu3 }
 0x1d1   :  { %v518_v48 = vadd.f32 %v517_v2, %v494_v47  ;;  %v172_v56 = vpop.f32.mrf.mxu0  ;;  %v243_v1 = vpop.f32.mrf.mxu1 }
 0x1d2   :  { %723 = vmatpush.msrb.mxu2 %v172_v56  ;;  %746 = vmatpush.msrb.mxu3 %v243_v1  ;;  %v1867_v56 = vld [vmem:[%s2873_s0 + $0x60] sm:$0xff]  ;;  %v1868_v1 = vld [vmem:[%s2873_s0 + $0x68] sm:$0xff] }
 0x1d3   :  { %v631_v11 = vmul.f32 %v2359_v22, %v518_v48 }
 0x1d4   :  { %724 = vmatpush.msrb.mxu2 %v169_v50  ;;  %747 = vmatpush.msrb.mxu3 %v240_v51 }
 0x1d5   :  { %v640_v12 = vsel %vm636_vm7, %v631_v11, -inf }
 0x1d6   :  { %641 = vmax.xlane.f32.xlu1 %v640_v12 }
 0x1d8   :  { %v537_v43 = vpop.f32.mrf.mxu2  ;;  %v560_v4 = vpop.f32.mrf.mxu3 }
 0x1d9   :  { %v561_v5 = vadd.f32 %v560_v4, %v537_v43  ;;  %v175_v12 = vpop.f32.mrf.mxu0  ;;  %v246_v43 = vpop.f32.mrf.mxu1 }
 0x1db   :  { %v632_v8 = vmul.f32 %v2365_v3, %v561_v5 }
 0x1dd   :  { %v643_v9 = vsel %vm636_vm7, %v632_v8, -inf }
 0x1de   :  { %644 = vmax.xlane.f32.xlu0 %v643_v9 }
 0x1e1   :  { %v540_v20 = vpop.f32.mrf.mxu2  ;;  %v563_v21 = vpop.f32.mrf.mxu3 }
 0x1e2   :  { %v564_v13 = vadd.f32 %v563_v21, %v540_v20  ;;  %v178_v4 = vpop.f32.mrf.mxu0  ;;  %v249_v5 = vpop.f32.mrf.mxu1 }
 0x1e3   :  { %775 = vmatpush.msra.mxu2 %v178_v4  ;;  %798 = vmatpush.msra.mxu3 %v249_v5  ;;  %v2043_v4 = vld [vmem:[%s2874_s1 + $0x38] sm:$0xff]  ;;  %v2044_v5 = vld [vmem:[%s2874_s1 + $0x40] sm:$0xff] }
 0x1e4   :  { %v633_v14 = vmul.f32 %v2365_v3, %v564_v13 }
 0x1e5   :  { %776 = vmatpush.msra.mxu2 %v175_v12  ;;  %799 = vmatpush.msra.mxu3 %v246_v43  ;;  %v2041_v12 = vld [vmem:[%s2874_s1 + $0x28] sm:$0xff]  ;;  %v2042_v43 = vld [vmem:[%s2874_s1 + $0x30] sm:$0xff] }
 0x1e6   :  { %v646_v15 = vsel %vm636_vm7, %v633_v14, -inf }
 0x1e7   :  { %647 = vmax.xlane.f32.xlu2 %v646_v15 }
 0x1e9   :  { %v583_v17 = vpop.f32.mrf.mxu2  ;;  %v606_v52 = vpop.f32.mrf.mxu3 }
 0x1ea   :  { %v607_v53 = vadd.f32 %v606_v52, %v583_v17  ;;  %v252_v9 = vpop.f32.mrf.mxu1 }
 0x1ec   :  { %v634_v18 = vmul.f32 %v2389_v16, %v607_v53 }
 0x1ee   :  { %v649_v19 = vsel %vm636_vm7, %v634_v18, -inf }
 0x1ef   :  { %650 = vmax.xlane.f32.xlu1 %v649_v19 }
 0x1f1   :  { %v586_v24 = vpop.f32.mrf.mxu2  ;;  %v609_v25 = vpop.f32.mrf.mxu3 }
 0x1f2   :  { %v610_v32 = vadd.f32 %v609_v25, %v586_v24  ;;  %v255_v17 = vpop.f32.mrf.mxu1 }
 0x1f4   :  { %v635_v33 = vmul.f32 %v2389_v16, %v610_v32 }
 0x1f6   :  { %v652_v26 = vsel %vm636_vm7, %v635_v33, -inf }
 0x1f7   :  { %653 = vmax.xlane.f32.xlu2 %v652_v26 }
 0x241   :  { %v639_v35 = vpop.xlane.xlu2 %638 }
 0x242   :  { %v655_v36 = vsub.f32 %v630_v62, %v639_v35 }
 0x244   :  { %v661_v57 = vmul.f32 1.442695, %v655_v36 }
 0x246   :  { %1964 = vpow2.f32 %v661_v57 }
 0x249   :  { %v642_v29 = vpop.xlane.xlu1 %641 }
 0x24a   :  { %v656_v58 = vsub.f32 %v631_v11, %v642_v29 }
 0x24c   :  { %v1965_v30 = vpop.eup %1964  ;;  %v663_v37 = vmul.f32 1.442695, %v656_v58 }
 0x24d   :  { %v673_v38 = vsel %vm636_vm7, %v1965_v30, 0.0 }
 0x24e   :  { %1966 = vpow2.f32 %v663_v37  ;;  %674 = vadd.xlane.f32.xlu1 %v673_v38 }
 0x251   :  { %v645_v41 = vpop.xlane.xlu0 %644 }
 0x252   :  { %v657_v44 = vsub.f32 %v632_v8, %v645_v41  ;;  %v181_v8 = vpop.f32.mrf.mxu0 }
 0x254   :  { %v2432_v45 = vpop.eup %1966  ;;  %v665_v46 = vmul.f32 1.442695, %v657_v44 }
 0x255   :  { %v676_v49 = vsel %vm636_vm7, %v2432_v45, 0.0 }
 0x256   :  { %1968 = vpow2.f32 %v665_v46  ;;  %677 = vadd.xlane.f32.xlu2 %v676_v49 }
 0x25a   :  { %v648_v54 = vpop.xlane.xlu2 %647  ;;  %v184_v13 = vpop.f32.mrf.mxu0 }
 0x25b   :  { %v658_v39 = vsub.f32 %v633_v14, %v648_v54 }
 0x25c   :  { %v1969_v40 = vpop.eup %1968 }
 0x25d   :  { %v667_v55 = vmul.f32 1.442695, %v658_v39  ;;  %v679_v0 = vsel %vm636_vm7, %v1969_v40, 0.0 }
 0x25e   :  { %680 = vadd.xlane.f32.xlu0 %v679_v0  ;;  %v1870_v0 = vld [vmem:[%s2873_s0 + $0x78] sm:$0xff] }
 0x25f   :  { %1970 = vpow2.f32 %v667_v55  ;;  %v1869_v55 = vld [vmem:[%s2873_s0 + $0x70] sm:$0xff] }
 0x262   :  { %v651_v59 = vpop.xlane.xlu1 %650 }
 0x263   :  { %v659_v60 = vsub.f32 %v634_v18, %v651_v59  ;;  %v1865_v59 = vld [vmem:[%s2873_s0 + $0x50] sm:$0xff] }
 0x265   :  { %v1971_v61 = vpop.eup %1970  ;;  %v669_v6 = vmul.f32 1.442695, %v659_v60  ;;  %v1866_v60 = vld [vmem:[%s2873_s0 + $0x58] sm:$0xff] }
 0x266   :  { %v682_v23 = vsel %vm636_vm7, %v1971_v61, 0.0 }
 0x267   :  { %1972 = vpow2.f32 %v669_v6  ;;  %683 = vadd.xlane.f32.xlu1 %v682_v23  ;;  %v1864_v6 = vld [vmem:[%s2873_s0 + $0x48] sm:$0xff] }
 0x268   :  { %v43_v23 = vld [vmem:[%s2876_s3 + $0x8] sm:$0xff] }
 0x26a   :  { %v654_v7 = vpop.xlane.xlu2 %653 }
 0x26b   :  { %v660_v62 = vsub.f32 %v635_v33, %v654_v7  ;;  %v44_v7 = vld [vmem:[%s2876_s3 + $0x10] sm:$0xff] }
 0x26d   :  { %v1973_v63 = vpop.eup %1972  ;;  %v671_v47 = vmul.f32 1.442695, %v660_v62  ;;  %v45_v62 = vld [vmem:[%s2876_s3 + $0x18] sm:$0xff] }
 0x26e   :  { %v685_v2 = vsel %vm636_vm7, %v1973_v63, 0.0 }
 0x26f   :  { %1974 = vpow2.f32 %v671_v47  ;;  %686 = vadd.xlane.f32.xlu2 %v685_v2  ;;  %v2037_v47 = vld [vmem:[%s2874_s1 + $0x8] sm:$0xff]  ;;  %v2038_v2 = vld [vmem:[%s2874_s1 + $0x10] sm:$0xff] }
 0x275   :  { %v1975_v48 = vpop.eup %1974 }
 0x276   :  { %v688_v11 = vsel %vm636_vm7, %v1975_v48, 0.0 }
 0x277   :  { %689 = vadd.xlane.f32.xlu0 %v688_v11  ;;  %v2040_v11 = vld [vmem:[%s2874_s1 + $0x20] sm:$0xff] }
 0x2c1   :  { %v675_v20 = vpop.xlane.xlu1 %674 }
 0x2c2   :  { %1976 = vrcp.f32 %v675_v20  ;;  %v2047_v20 = vld [vmem:[%s2874_s1 + $0x58] sm:$0xff] }
 0x2c8   :  { %v1977_v21 = vpop.eup %1976 }
 0x2c9   :  { %v697_v14 = vmul.f32 %v1977_v21, %v1965_v30  ;;  %v678_v15 = vpop.xlane.xlu2 %677 }
 0x2ca   :  { %1978 = vrcp.f32 %v678_v15 }
 0x2cb   :  { %958 = vst.msk [vmem:[#allocation4] sm:$0xff] %vm636_vm7, %v697_v14  ;;  %1843 = vmatmul.msk.f32.vlgmr.msrb.gmra.mxu2 %vm636_vm7, %v697_v14  ;;  %1845 = vmatmul.msk.f32.vlgmr.msrb.gmra.mxu3 %vm636_vm7, %v697_v14 }
 0x2cc   :  { %827 = vmatpush.msrb.mxu2 %v184_v13  ;;  %850 = vmatpush.msrb.mxu3 %v255_v17 }
 0x2ce   :  { %828 = vmatpush.msrb.mxu2 %v181_v8  ;;  %851 = vmatpush.msrb.mxu3 %v252_v9  ;;  %v2045_v8 = vld [vmem:[%s2874_s1 + $0x48] sm:$0xff]  ;;  %v2046_v9 = vld [vmem:[%s2874_s1 + $0x50] sm:$0xff] }
 0x2d0   :  { %v1979_v52 = vpop.eup %1978 }
 0x2d1   :  { %v681_v53 = vpop.xlane.xlu0 %680  ;;  %v698_v18 = vmul.f32 %v1979_v52, %v2432_v45 }
 0x2d2   :  { %1980 = vrcp.f32 %v681_v53 }
 0x2d3   :  { %1844 = vmatmul.msk.f32.gmra.mxu2 %vm636_vm7, %v698_v18  ;;  %959 = vst.msk [vmem:[#allocation4 + $0x8] sm:$0xff] %vm636_vm7, %v698_v18  ;;  %1846 = vmatmul.msk.f32.gmra.mxu3 %vm636_vm7, %v698_v18 }
 0x2d8   :  { %v1981_v19 = vpop.eup %1980 }
 0x2d9   :  { %v699_v24 = vmul.f32 %v1981_v19, %v1969_v40  ;;  %v42_v40 = vld [vmem:[%s2876_s3] sm:$0xff] }
 0x2da   :  { %v684_v25 = vpop.xlane.xlu1 %683 }
 0x2db   :  { %960 = vst.msk [vmem:[#allocation4 + $0x10] sm:$0xff] %vm636_vm7, %v699_v24  ;;  %1982 = vrcp.f32 %v684_v25  ;;  %1847 = vmatmul.msk.f32.vlgmr.msra.gmra.mxu2 %vm636_vm7, %v699_v24  ;;  %1849 = vmatmul.msk.f32.vlgmr.msra.gmra.mxu3 %vm636_vm7, %v699_v24 }
 0x2e1   :  { %v1983_v32 = vpop.eup %1982 }
 0x2e2   :  { %v687_v33 = vpop.xlane.xlu2 %686  ;;  %v700_v26 = vmul.f32 %v1983_v32, %v1971_v61  ;;  %v1863_v61 = vld [vmem:[%s2873_s0 + $0x40] sm:$0xff] }
 0x2e3   :  { %1984 = vrcp.f32 %v687_v33 }
 0x2e4   :  { %1848 = vmatmul.msk.f32.gmra.mxu2 %vm636_vm7, %v700_v26  ;;  %961 = vst.msk [vmem:[#allocation4 + $0x18] sm:$0xff] %vm636_vm7, %v700_v26  ;;  %1850 = vmatmul.msk.f32.gmra.mxu3 %vm636_vm7, %v700_v26 }
 0x2e9   :  { %v1985_v35 = vpop.eup %1984 }
 0x2ea   :  { %v701_v36 = vmul.f32 %v1985_v35, %v1973_v63  ;;  %v690_v57 = vpop.xlane.xlu0 %689  ;;  %v2036_v63 = vld [vmem:[%s2874_s1] sm:$0xff] }
 0x2eb   :  { %1986 = vrcp.f32 %v690_v57 }
 0x2ec   :  { %962 = vst.msk [vmem:[#allocation4 + $0x20] sm:$0xff] %vm636_vm7, %v701_v36  ;;  %1851 = vmatmul.msk.f32.vlgmr.msrb.gmra.mxu2 %vm636_vm7, %v701_v36  ;;  %1853 = vmatmul.msk.f32.vlgmr.msrb.gmra.mxu3 %vm636_vm7, %v701_v36 }
 0x2f1   :  { %v1987_v29 = vpop.eup %1986 }
 0x2f2   :  { %v702_v58 = vmul.f32 %v1987_v29, %v1975_v48  ;;  %v2039_v48 = vld [vmem:[%s2874_s1 + $0x18] sm:$0xff] }
 0x2f4   :  { %1852 = vmatmul.msk.f32.gmra.mxu2 %vm636_vm7, %v702_v58  ;;  %963 = vst.msk [vmem:[#allocation4 + $0x28] sm:$0xff] %vm636_vm7, %v702_v58  ;;  %1854 = vmatmul.msk.f32.gmra.mxu3 %vm636_vm7, %v702_v58 }
 0x34e   :  { %v726_v30 = vpop.f32.mrf.mxu2  ;;  %v749_v37 = vpop.f32.mrf.mxu3 }
 0x356   :  { %v729_v38 = vpop.f32.mrf.mxu2  ;;  %v752_v41 = vpop.f32.mrf.mxu3 }
 0x35e   :  { %v778_v44 = vpop.f32.mrf.mxu2  ;;  %v801_v45 = vpop.f32.mrf.mxu3 }
 0x367   :  { %v781_v46 = vpop.f32.mrf.mxu2  ;;  %v804_v49 = vpop.f32.mrf.mxu3 }
 0x36f   :  { %v830_v50 = vpop.f32.mrf.mxu2  ;;  %v853_v51 = vpop.f32.mrf.mxu3 }
 0x377   :  { %v833_v54 = vpop.f32.mrf.mxu2  ;;  %v856_v39 = vpop.f32.mrf.mxu3 }
 0x378   :  { %902 = vmatpush.msra.mxu2 %v833_v54  ;;  %931 = vmatpush.msra.mxu3 %v856_v39 }
 0x37a   :  { %903 = vmatpush.msra.mxu2 %v830_v50  ;;  %932 = vmatpush.msra.mxu3 %v853_v51 }
 0x37c   :  { %904 = vmatpush.msra.mxu2 %v781_v46  ;;  %933 = vmatpush.msra.mxu3 %v804_v49 }
 0x37e   :  { %905 = vmatpush.msra.mxu2 %v778_v44  ;;  %934 = vmatpush.msra.mxu3 %v801_v45 }
 0x380   :  { %906 = vmatpush.msra.mxu2 %v729_v38  ;;  %935 = vmatpush.msra.mxu3 %v752_v41 }
 0x382   :  { %907 = vmatpush.msra.mxu2 %v726_v30  ;;  %936 = vmatpush.msra.mxu3 %v749_v37 }
 0x383   :  { %1855 = vmatmul.msk.f32.vlgmr.msra.gmra.mxu2 %vm879_vm8, %v42_v40  ;;  %1859 = vmatmul.msk.f32.vlgmr.msra.gmra.mxu3 %vm879_vm8, %v42_v40 }
 0x384   :  { %985 = vmatpush.msrb.mxu2 %v1869_v55  ;;  %1056 = vmatpush.msrb.mxu3 %v1870_v0 }
 0x386   :  { %986 = vmatpush.msrb.mxu2 %v1867_v56  ;;  %1057 = vmatpush.msrb.mxu3 %v1868_v1 }
 0x388   :  { %987 = vmatpush.msrb.mxu2 %v1865_v59  ;;  %1058 = vmatpush.msrb.mxu3 %v1866_v60 }
 0x38a   :  { %988 = vmatpush.msrb.mxu2 %v1863_v61  ;;  %1059 = vmatpush.msrb.mxu3 %v1864_v6 }
 0x38b   :  { %1856 = vmatmul.msk.f32.gmra.mxu2 %vm879_vm8, %v43_v23  ;;  %1860 = vmatmul.msk.f32.gmra.mxu3 %vm879_vm8, %v43_v23 }
 0x393   :  { %1857 = vmatmul.msk.f32.gmra.mxu2 %vm879_vm8, %v44_v7  ;;  %1861 = vmatmul.msk.f32.gmra.mxu3 %vm879_vm8, %v44_v7 }
 0x39b   :  { %1858 = vmatmul.msk.f32.gmra.mxu2 %vm879_vm8, %v45_v62  ;;  %1862 = vmatmul.msk.f32.gmra.mxu3 %vm879_vm8, %v45_v62 }
 0x3a3   :  { %1871 = vmatmul.msk.f32.vlgmr.msrb.gmra.mxu2 %vm61_vm0, %v2036_v63  ;;  %1889 = vmatmul.msk.f32.vlgmr.msrb.gmra.mxu3 %vm61_vm0, %v2036_v63 }
 0x3ab   :  { %1872 = vmatmul.msk.f32.gmra.mxu2 %vm61_vm0, %v2037_v47  ;;  %1890 = vmatmul.msk.f32.gmra.mxu3 %vm61_vm0, %v2037_v47 }
 0x3b3   :  { %1873 = vmatmul.msk.f32.gmra.mxu2 %vm61_vm0, %v2038_v2  ;;  %1891 = vmatmul.msk.f32.gmra.mxu3 %vm61_vm0, %v2038_v2 }
 0x3bb   :  { %1874 = vmatmul.msk.f32.gmra.mxu2 %vm61_vm0, %v2039_v48  ;;  %1892 = vmatmul.msk.f32.gmra.mxu3 %vm61_vm0, %v2039_v48 }
 0x3c3   :  { %1875 = vmatmul.msk.f32.gmra.mxu2 %vm61_vm0, %v2040_v11  ;;  %1893 = vmatmul.msk.f32.gmra.mxu3 %vm61_vm0, %v2040_v11 }
 0x3cb   :  { %1876 = vmatmul.msk.f32.gmra.mxu2 %vm61_vm0, %v2041_v12  ;;  %1894 = vmatmul.msk.f32.gmra.mxu3 %vm61_vm0, %v2041_v12 }
 0x3d3   :  { %1877 = vmatmul.msk.f32.gmra.mxu2 %vm61_vm0, %v2042_v43  ;;  %1895 = vmatmul.msk.f32.gmra.mxu3 %vm61_vm0, %v2042_v43 }
 0x3db   :  { %1878 = vmatmul.msk.f32.gmra.mxu2 %vm61_vm0, %v2043_v4  ;;  %1896 = vmatmul.msk.f32.gmra.mxu3 %vm61_vm0, %v2043_v4 }
 0x3e3   :  { %1879 = vmatmul.msk.f32.gmra.mxu2 %vm61_vm0, %v2044_v5  ;;  %1897 = vmatmul.msk.f32.gmra.mxu3 %vm61_vm0, %v2044_v5 }
 0x3eb   :  { %1880 = vmatmul.msk.f32.gmra.mxu2 %vm61_vm0, %v2045_v8  ;;  %1898 = vmatmul.msk.f32.gmra.mxu3 %vm61_vm0, %v2045_v8 }
 0x3f3   :  { %1881 = vmatmul.msk.f32.gmra.mxu2 %vm61_vm0, %v2046_v9  ;;  %1899 = vmatmul.msk.f32.gmra.mxu3 %vm61_vm0, %v2046_v9 }
 0x3fb   :  { %1882 = vmatmul.msk.f32.gmra.mxu2 %vm61_vm0, %v2047_v20  ;;  %1900 = vmatmul.msk.f32.gmra.mxu3 %vm61_vm0, %v2047_v20 }
 0x403   :  { %1883 = vmatmul.msk.f32.gmra.mxu2 %vm61_vm0, %v2370_v42  ;;  %1901 = vmatmul.msk.f32.gmra.mxu3 %vm61_vm0, %v2370_v42 }
 0x406   :  { %v2567_v21 = vpop.f32.mrf.mxu2  ;;  %v2569_v13 = vpop.f32.mrf.mxu3 }
 0x40b   :  { %1884 = vmatmul.msk.f32.gmra.mxu2 %vm61_vm0, %v2381_v10  ;;  %1902 = vmatmul.msk.f32.gmra.mxu3 %vm61_vm0, %v2381_v10 }
 0x40e   :  { %v2575_v14 = vpop.f32.mrf.mxu2  ;;  %v2577_v15 = vpop.f32.mrf.mxu3 }
 0x413   :  { %1885 = vmatmul.msk.f32.gmra.mxu2 %vm61_vm0, %v2398_v27  ;;  %1903 = vmatmul.msk.f32.gmra.mxu3 %vm61_vm0, %v2398_v27 }
 0x416   :  { %v2583_v42 = vpop.f32.mrf.mxu2  ;;  %v2585_v17 = vpop.f32.mrf.mxu3 }
 0x41b   :  { %1886 = vmatmul.msk.f32.gmra.mxu2 %vm61_vm0, %v2407_v28  ;;  %1904 = vmatmul.msk.f32.gmra.mxu3 %vm61_vm0, %v2407_v28 }
 0x41e   :  { %v2591_v10 = vpop.f32.mrf.mxu2  ;;  %v2593_v52 = vpop.f32.mrf.mxu3 }
 0x423   :  { %1887 = vmatmul.msk.f32.gmra.mxu2 %vm61_vm0, %v2416_v31  ;;  %1905 = vmatmul.msk.f32.gmra.mxu3 %vm61_vm0, %v2416_v31 }
 0x426   :  { %v2599_v27 = vpop.f32.mrf.mxu2  ;;  %v2601_v53 = vpop.f32.mrf.mxu3 }
 0x427   :  { %v1115_v18 = vmul.f32 %v2599_v27, %v2599_v27  ;;  %v1116_v28 = vmul.f32 %v2601_v53, %v2601_v53 }
 0x429   :  { %v1139_v19 = vadd.f32 %v1116_v28, %v1115_v18 }
 0x42b   :  { %1140 = vadd.xlane.f32.xlu2 %v1139_v19  ;;  %1888 = vmatmul.msk.f32.gmra.mxu2 %vm61_vm0, %v2425_v34 }
 0x42c   :  { %1906 = vmatmul.msk.f32.gmra.mxu3 %vm61_vm0, %v2425_v34 }
 0x42e   :  { %v2611_v24 = vpop.f32.mrf.mxu2  ;;  %v2613_v31 = vpop.f32.mrf.mxu3 }
 0x42f   :  { %v1117_v25 = vmul.f32 %v2611_v24, %v2611_v24  ;;  %v1118_v32 = vmul.f32 %v2613_v31, %v2613_v31 }
 0x431   :  { %v1142_v33 = vadd.f32 %v1118_v32, %v1117_v25 }
 0x433   :  { %1143 = vadd.xlane.f32.xlu1 %v1142_v33 }
 0x436   :  { %v2619_v26 = vpop.f32.mrf.mxu2  ;;  %v2621_v35 = vpop.f32.mrf.mxu3 }
 0x437   :  { %v1119_v51 = vmul.f32 %v2619_v26, %v2619_v26  ;;  %v1120_v54 = vmul.f32 %v2621_v35, %v2621_v35 }
 0x439   :  { %v1145_v56 = vadd.f32 %v1120_v54, %v1119_v51 }
 0x43e   :  { %v2623_v36 = vpop.f32.mrf.mxu2  ;;  %v2625_v57 = vpop.f32.mrf.mxu3 }
 0x43f   :  { %v1121_v34 = vmul.f32 %v2623_v36, %v2623_v36  ;;  %v1122_v29 = vmul.f32 %v2625_v57, %v2625_v57 }
 0x441   :  { %v1148_v58 = vadd.f32 %v1122_v29, %v1121_v34 }
 0x443   :  { %1149 = vadd.xlane.f32.xlu2 %v1148_v58 }
 0x446   :  { %v2631_v30 = vpop.f32.mrf.mxu2  ;;  %v2633_v37 = vpop.f32.mrf.mxu3 }
 0x447   :  { %v1123_v47 = vmul.f32 %v2631_v30, %v2631_v30  ;;  %v1124_v2 = vmul.f32 %v2633_v37, %v2633_v37 }
 0x449   :  { %v1151_v4 = vadd.f32 %v1124_v2, %v1123_v47 }
 0x44e   :  { %v2635_v38 = vpop.f32.mrf.mxu2  ;;  %v2637_v41 = vpop.f32.mrf.mxu3 }
 0x44f   :  { %v1125_v59 = vmul.f32 %v2635_v38, %v2635_v38  ;;  %v1126_v60 = vmul.f32 %v2637_v41, %v2637_v41 }
 0x451   :  { %v1154_v62 = vadd.f32 %v1126_v60, %v1125_v59 }
 0x456   :  { %v2639_v44 = vpop.f32.mrf.mxu2  ;;  %v2641_v45 = vpop.f32.mrf.mxu3 }
 0x457   :  { %v1127_v46 = vmul.f32 %v2639_v44, %v2639_v44  ;;  %v1128_v49 = vmul.f32 %v2641_v45, %v2641_v45 }
 0x459   :  { %v1157_v50 = vadd.f32 %v1128_v49, %v1127_v46 }
 0x45b   :  { %1158 = vadd.xlane.f32.xlu0 %v1157_v50 }
 0x45e   :  { %v2651_v39 = vpop.f32.mrf.mxu2  ;;  %v2653_v40 = vpop.f32.mrf.mxu3 }
 0x45f   :  { %v1129_v55 = vmul.f32 %v2651_v39, %v2651_v39  ;;  %v1130_v0 = vmul.f32 %v2653_v40, %v2653_v40 }
 0x461   :  { %v1160_v1 = vadd.f32 %v1130_v0, %v1129_v55 }
 0x463   :  { %1146 = vadd.xlane.f32.xlu0 %v1145_v56  ;;  %1161 = vadd.xlane.f32.xlu1 %v1160_v1 }
 0x466   :  { %v2663_v61 = vpop.f32.mrf.mxu2  ;;  %v2665_v6 = vpop.f32.mrf.mxu3 }
 0x467   :  { %v1131_v23 = vmul.f32 %v2663_v61, %v2663_v61  ;;  %v1132_v7 = vmul.f32 %v2665_v6, %v2665_v6 }
 0x469   :  { %v1163_v63 = vadd.f32 %v1132_v7, %v1131_v23 }
 0x46b   :  { %1155 = vadd.xlane.f32.xlu0 %v1154_v62  ;;  %1164 = vadd.xlane.f32.xlu1 %v1163_v63 }
 0x46e   :  { %v2675_v48 = vpop.f32.mrf.mxu2  ;;  %v2677_v11 = vpop.f32.mrf.mxu3 }
 0x46f   :  { %v1133_v12 = vmul.f32 %v2675_v48, %v2675_v48  ;;  %v1134_v43 = vmul.f32 %v2677_v11, %v2677_v11 }
 0x471   :  { %v1166_v5 = vadd.f32 %v1134_v43, %v1133_v12 }
 0x473   :  { %1152 = vadd.xlane.f32.xlu1 %v1151_v4  ;;  %1167 = vadd.xlane.f32.xlu2 %v1166_v5 }
 0x476   :  { %v2683_v8 = vpop.f32.mrf.mxu2  ;;  %v2685_v9 = vpop.f32.mrf.mxu3 }
 0x477   :  { %v1135_v20 = vmul.f32 %v2683_v8, %v2683_v8  ;;  %v1136_v18 = vmul.f32 %v2685_v9, %v2685_v9 }
 0x479   :  { %v1169_v28 = vadd.f32 %v1136_v18, %v1135_v20 }
 0x47b   :  { %1170 = vadd.xlane.f32.xlu2 %v1169_v28 }
 0x47e   :  { %v2691_v19 = vpop.f32.mrf.mxu2  ;;  %v2693_v25 = vpop.f32.mrf.mxu3 }
 0x47f   :  { %v1137_v32 = vmul.f32 %v2691_v19, %v2691_v19  ;;  %v1138_v33 = vmul.f32 %v2693_v25, %v2693_v25 }
 0x481   :  { %v1172_v34 = vadd.f32 %v1138_v33, %v1137_v32 }
 0x483   :  { %1173 = vadd.xlane.f32.xlu0 %v1172_v34 }
 0x49e   :  { %v1141_v29 = vpop.xlane.xlu2 %1140 }
 0x49f   :  { %v1175_v58 = vmax.f32 %v1141_v29, 1e-24 }
 0x4a1   :  { %1988 = vrsqrt.f32 %v1175_v58  ;;  %vm1193_vm12 = vweird.f32 %v1175_v58 }
 0x4a6   :  { %v1144_v46 = vpop.xlane.xlu1 %1143 }
 0x4a7   :  { %v1989_v49 = vpop.eup %1988  ;;  %v1176_v50 = vmax.f32 %v1144_v46, 1e-24 }
 0x4a8   :  { %v1188_v51 = vmul.f32 %v1989_v49, %v1175_v58  ;;  %vm1194_vm10 = vweird.f32 %v1989_v49 }
 0x4a9   :  { %1990 = vrsqrt.f32 %v1176_v50  ;;  %vm1203_vm9 = vweird.f32 %v1176_v50  ;;  %vm1195_vm13 = vmor %vm1193_vm12, %vm1194_vm10 }
 0x4aa   :  { %v1189_v54 = vmul.f32 %v1989_v49, %v1188_v51 }
 0x4ac   :  { %v1190_v0 = vmul.f32 0.5, %v1189_v54 }
 0x4ae   :  { %v1191_v59 = vsub.f32 1.5, %v1190_v0 }
 0x4af   :  { %v1991_v55 = vpop.eup %1990 }
 0x4b0   :  { %v1198_v56 = vmul.f32 %v1991_v55, %v1176_v50  ;;  %vm1204_vm0 = vweird.f32 %v1991_v55  ;;  %v1192_v47 = vmul.f32 %v1989_v49, %v1191_v59 }
 0x4b1   :  { %vm1205_vm11 = vmor %vm1203_vm9, %vm1204_vm0 }
 0x4b2   :  { %v1199_v1 = vmul.f32 %v1991_v55, %v1198_v56  ;;  %v1196_v4 = vsel %vm1195_vm13, %v1989_v49, %v1192_v47 }
 0x4b3   :  { %v1307_v20 = vmul.f32 %v1196_v4, %v2599_v27  ;;  %v1308_v18 = vmul.f32 %v1196_v4, %v2601_v53 }
 0x4b4   :  { %v1200_v60 = vmul.f32 0.5, %v1199_v1 }
 0x4b6   :  { %v1201_v23 = vsub.f32 1.5, %v1200_v60  ;;  %v1150_v7 = vpop.xlane.xlu2 %1149 }
 0x4b7   :  { %v1178_v62 = vmax.f32 %v1150_v7, 1e-24 }
 0x4b8   :  { %v1202_v63 = vmul.f32 %v1991_v55, %v1201_v23 }
 0x4b9   :  { %1992 = vrsqrt.f32 %v1178_v62  ;;  %vm1223_vm15 = vweird.f32 %v1178_v62 }
 0x4ba   :  { %v1206_v2 = vsel %vm1205_vm11, %v1991_v55, %v1202_v63 }
 0x4bb   :  { %v1309_v12 = vmul.f32 %v1206_v2, %v2611_v24  ;;  %v1310_v43 = vmul.f32 %v1206_v2, %v2613_v31 }
 0x4bd   :  { %1345 = vmatpush.xpose.msrb.mxu0 %v1309_v12  ;;  %1368 = vmatpush.xpose.msrb.mxu1 %v1310_v43 }
 0x4bf   :  { %v1993_v5 = vpop.eup %1992 }
 0x4c0   :  { %v1218_v28 = vmul.f32 %v1993_v5, %v1178_v62  ;;  %vm1224_vm14 = vweird.f32 %v1993_v5 }
 0x4c1   :  { %1346 = vmatpush.xpose.msrb.mxu0 %v1307_v20  ;;  %1369 = vmatpush.xpose.msrb.mxu1 %v1308_v18  ;;  %vm1225_vm1 = vmor %vm1223_vm15, %vm1224_vm14 }
 0x4c2   :  { %v1219_v32 = vmul.f32 %v1993_v5, %v1218_v28 }
 0x4c4   :  { %v1220_v33 = vmul.f32 0.5, %v1219_v32 }
 0x4c6   :  { %v1221_v34 = vsub.f32 1.5, %v1220_v33 }
 0x4c8   :  { %v1222_v29 = vmul.f32 %v1993_v5, %v1221_v34 }
 0x4ca   :  { %v1226_v24 = vsel %vm1225_vm1, %v1993_v5, %v1222_v29 }
 0x4cb   :  { %v1313_v31 = vmul.f32 %v1226_v24, %v2623_v36  ;;  %v1314_v58 = vmul.f32 %v1226_v24, %v2625_v57 }
 0x4cd   :  { %1391 = vmatpush.xpose.msra.mxu0 %v1313_v31  ;;  %1414 = vmatpush.xpose.msra.mxu1 %v1314_v58 }
 0x4ce   :  { %v1159_v27 = vpop.xlane.xlu0 %1158 }
 0x4cf   :  { %v1181_v46 = vmax.f32 %v1159_v27, 1e-24 }
 0x4d1   :  { %1994 = vrsqrt.f32 %v1181_v46  ;;  %vm1253_vm3 = vweird.f32 %v1181_v46 }
 0x4d6   :  { %v1147_v53 = vpop.xlane.xlu0 %1146  ;;  %v1162_v49 = vpop.xlane.xlu1 %1161 }
 0x4d7   :  { %v1995_v50 = vpop.eup %1994  ;;  %v1177_v51 = vmax.f32 %v1147_v53, 1e-24  ;;  %v1182_v54 = vmax.f32 %v1162_v49, 1e-24 }
 0x4d8   :  { %v1248_v55 = vmul.f32 %v1995_v50, %v1181_v46  ;;  %vm1254_vm2 = vweird.f32 %v1995_v50 }
 0x4d9   :  { %1996 = vrsqrt.f32 %v1177_v51  ;;  %vm1255_vm4 = vmor %vm1253_vm3, %vm1254_vm2  ;;  %vm1213_vm0 = vweird.f32 %v1177_v51  ;;  %vm1263_vm10 = vweird.f32 %v1182_v54 }
 0x4da   :  { %v1249_v0 = vmul.f32 %v1995_v50, %v1248_v55  ;;  %1998 = vrsqrt.f32 %v1182_v54 }
 0x4dc   :  { %v1250_v56 = vmul.f32 0.5, %v1249_v0 }
 0x4de   :  { %v1251_v1 = vsub.f32 1.5, %v1250_v56  ;;  %v1156_v36 = vpop.xlane.xlu0 %1155  ;;  %v1165_v59 = vpop.xlane.xlu1 %1164 }
 0x4df   :  { %v1997_v57 = vpop.eup %1996  ;;  %v2705_v60 = vmax.f32 %v1156_v36, 1e-24  ;;  %v2707_v23 = vmax.f32 %v1165_v59, 1e-24 }
 0x4e0   :  { %v1999_v7 = vpop.eup %1998  ;;  %v1208_v62 = vmul.f32 %v1997_v57, %v1177_v51  ;;  %v1252_v63 = vmul.f32 %v1995_v50, %v1251_v1  ;;  %vm1214_vm5 = vweird.f32 %v1997_v57 }
 0x4e1   :  { %v1258_v47 = vmul.f32 %v1999_v7, %v1182_v54  ;;  %2000 = vrsqrt.f32 %v2705_v60  ;;  %vm1264_vm6 = vweird.f32 %v1999_v7  ;;  %vm1215_vm9 = vmor %vm1213_vm0, %vm1214_vm5  ;;  %vm1243_vm14 = vweird.f32 %v2705_v60 }
 0x4e2   :  { %v1209_v2 = vmul.f32 %v1997_v57, %v1208_v62  ;;  %2002 = vrsqrt.f32 %v2707_v23  ;;  %v1256_v12 = vsel %vm1255_vm4, %v1995_v50, %v1252_v63  ;;  %vm1265_vm11 = vmor %vm1263_vm10, %vm1264_vm6  ;;  %vm1273_vm1 = vweird.f32 %v2707_v23 }
 0x4e3   :  { %v1259_v43 = vmul.f32 %v1999_v7, %v1258_v47  ;;  %v1319_v4 = vmul.f32 %v1256_v12, %v2639_v44  ;;  %v1320_v5 = vmul.f32 %v1256_v12, %v2641_v45 }
 0x4e4   :  { %v1210_v20 = vmul.f32 0.5, %v1209_v2 }
 0x4e5   :  { %v1260_v18 = vmul.f32 0.5, %v1259_v43  ;;  %1347 = vmatmul.f32.vlgmr.msrb.gmra.mxu0 %v1319_v4  ;;  %1370 = vmatmul.f32.vlgmr.msrb.gmra.mxu1 %v1320_v5 }
 0x4e6   :  { %v1211_v28 = vsub.f32 1.5, %v1210_v20  ;;  %v1153_v32 = vpop.xlane.xlu1 %1152  ;;  %v1168_v33 = vpop.xlane.xlu2 %1167 }
 0x4e7   :  { %v2001_v34 = vpop.eup %2000  ;;  %v1261_v29 = vsub.f32 1.5, %v1260_v18  ;;  %v2713_v24 = vmax.f32 %v1153_v32, 1e-24  ;;  %v2715_v31 = vmax.f32 %v1168_v33, 1e-24 }
 0x4e8   :  { %v2003_v58 = vpop.eup %2002  ;;  %v1238_v27 = vmul.f32 %v2001_v34, %v2705_v60  ;;  %v1212_v44 = vmul.f32 %v1997_v57, %v1211_v28  ;;  %vm1244_vm12 = vweird.f32 %v2001_v34 }
 0x4e9   :  { %v1268_v45 = vmul.f32 %v2003_v58, %v2707_v23  ;;  %2004 = vrsqrt.f32 %v2713_v24  ;;  %v1262_v53 = vmul.f32 %v1999_v7, %v1261_v29  ;;  %vm1274_vm13 = vweird.f32 %v2003_v58  ;;  %vm1245_vm15 = vmor %vm1243_vm14, %vm1244_vm12 }
 0x4ea   :  { %v1239_v46 = vmul.f32 %v2001_v34, %v1238_v27  ;;  %2006 = vrsqrt.f32 %v2715_v31  ;;  %v1216_v50 = vsel %vm1215_vm9, %v1997_v57, %v1212_v44  ;;  %vm1275_vm2 = vmor %vm1273_vm1, %vm1274_vm13  ;;  %vm1233_vm5 = vweird.f32 %v2713_v24 }
 0x4eb   :  { %v1269_v49 = vmul.f32 %v2003_v58, %v1268_v45  ;;  %v1266_v0 = vsel %vm1265_vm11, %v1999_v7, %v1262_v53  ;;  %v1311_v56 = vmul.f32 %v1216_v50, %v2619_v26  ;;  %v1312_v1 = vmul.f32 %v1216_v50, %v2621_v35 }
 0x4ec   :  { %v1240_v55 = vmul.f32 0.5, %v1239_v46  ;;  %v1321_v36 = vmul.f32 %v1266_v0, %v2651_v39  ;;  %v1322_v59 = vmul.f32 %v1266_v0, %v2653_v40  ;;  %vm1283_vm0 = vweird.f32 %v2715_v31 }
 0x4ed   :  { %v1270_v51 = vmul.f32 0.5, %v1269_v49  ;;  %1392 = vmatpush.xpose.msra.mxu0 %v1311_v56  ;;  %1415 = vmatpush.xpose.msra.mxu1 %v1312_v1 }
 0x4ee   :  { %v1241_v62 = vsub.f32 1.5, %v1240_v55  ;;  %v1171_v54 = vpop.xlane.xlu2 %1170  ;;  %1350 = vmatmul.f32.gmra.mxu0 %v1321_v36  ;;  %1373 = vmatmul.f32.gmra.mxu1 %v1322_v59 }
 0x4ef   :  { %v2005_v63 = vpop.eup %2004  ;;  %v1271_v47 = vsub.f32 1.5, %v1270_v51  ;;  %v1185_v57 = vmax.f32 %v1171_v54, 1e-24 }
 0x4f0   :  { %v2007_v7 = vpop.eup %2006  ;;  %v1242_v26 = vmul.f32 %v2001_v34, %v1241_v62  ;;  %v1228_v35 = vmul.f32 %v2005_v63, %v2713_v24  ;;  %vm1234_vm3 = vweird.f32 %v2005_v63 }
 0x4f1   :  { %v1272_v39 = vmul.f32 %v2003_v58, %v1271_v47  ;;  %v1278_v40 = vmul.f32 %v2007_v7, %v2715_v31  ;;  %2008 = vrsqrt.f32 %v1185_v57  ;;  %vm1284_vm4 = vweird.f32 %v2007_v7  ;;  %vm1235_vm6 = vmor %vm1233_vm5, %vm1234_vm3 }
 0x4f2   :  { %v1246_v2 = vsel %vm1245_vm15, %v2001_v34, %v1242_v26  ;;  %v1229_v12 = vmul.f32 %v2005_v63, %v1228_v35  ;;  %vm1285_vm9 = vmor %vm1283_vm0, %vm1284_vm4  ;;  %vm1293_vm11 = vweird.f32 %v1185_v57 }
 0x4f3   :  { %v1276_v43 = vsel %vm1275_vm2, %v2003_v58, %v1272_v39  ;;  %v1279_v4 = vmul.f32 %v2007_v7, %v1278_v40  ;;  %v1317_v5 = vmul.f32 %v1246_v2, %v2635_v38  ;;  %v1318_v20 = vmul.f32 %v1246_v2, %v2637_v41 }
 0x4f4   :  { %v1230_v18 = vmul.f32 0.5, %v1229_v12  ;;  %v1323_v60 = vmul.f32 %v1276_v43, %v2663_v61  ;;  %v1324_v28 = vmul.f32 %v1276_v43, %v2665_v6 }
 0x4f5   :  { %v1280_v32 = vmul.f32 0.5, %v1279_v4  ;;  %1437 = vmatpush.xpose.msrb.mxu0 %v1317_v5  ;;  %1460 = vmatpush.xpose.msrb.mxu1 %v1318_v20 }
 0x4f6   :  { %v1231_v23 = vsub.f32 1.5, %v1230_v18  ;;  %v1174_v33 = vpop.xlane.xlu0 %1173  ;;  %1393 = vmatmul.f32.vlgmr.msra.gmra.mxu0 %v1323_v60  ;;  %1416 = vmatmul.f32.vlgmr.msra.gmra.mxu1 %v1324_v28 }
 0x4f7   :  { %v2009_v34 = vpop.eup %2008  ;;  %v1281_v29 = vsub.f32 1.5, %v1280_v32  ;;  %v1186_v58 = vmax.f32 %v1174_v33, 1e-24 }
 0x4f8   :  { %v1288_v38 = vmul.f32 %v2009_v34, %v1185_v57  ;;  %v1232_v41 = vmul.f32 %v2005_v63, %v1231_v23  ;;  %vm1294_vm10 = vweird.f32 %v2009_v34 }
 0x4f9   :  { %2010 = vrsqrt.f32 %v1186_v58  ;;  %v1282_v61 = vmul.f32 %v2007_v7, %v1281_v29  ;;  %vm1295_vm12 = vmor %vm1293_vm11, %vm1294_vm10  ;;  %vm1303_vm14 = vweird.f32 %v1186_v58 }
 0x4fa   :  { %v1289_v6 = vmul.f32 %v2009_v34, %v1288_v38  ;;  %v1236_v27 = vsel %vm1235_vm6, %v2005_v63, %v1232_v41 }
 0x4fb   :  { %v1286_v44 = vsel %vm1285_vm9, %v2007_v7, %v1282_v61  ;;  %v1315_v45 = vmul.f32 %v1236_v27, %v2631_v30  ;;  %v1316_v46 = vmul.f32 %v1236_v27, %v2633_v37 }
 0x4fc   :  { %v1290_v53 = vmul.f32 0.5, %v1289_v6  ;;  %v1325_v49 = vmul.f32 %v1286_v44, %v2675_v48  ;;  %v1326_v24 = vmul.f32 %v1286_v44, %v2677_v11 }
 0x4fd   :  { %1438 = vmatpush.xpose.msrb.mxu0 %v1315_v45  ;;  %1461 = vmatpush.xpose.msrb.mxu1 %v1316_v46 }
 0x4fe   :  { %v1291_v50 = vsub.f32 1.5, %v1290_v53  ;;  %1396 = vmatmul.f32.gmra.mxu0 %v1325_v49  ;;  %1419 = vmatmul.f32.gmra.mxu1 %v1326_v24 }
 0x4ff   :  { %v2011_v31 = vpop.eup %2010 }
 0x500   :  { %v1292_v55 = vmul.f32 %v2009_v34, %v1291_v50  ;;  %v1298_v0 = vmul.f32 %v2011_v31, %v1186_v58  ;;  %vm1304_vm13 = vweird.f32 %v2011_v31 }
 0x501   :  { %vm1305_vm15 = vmor %vm1303_vm14, %vm1304_vm13 }
 0x502   :  { %v1296_v56 = vsel %vm1295_vm12, %v2009_v34, %v1292_v55  ;;  %v1299_v30 = vmul.f32 %v2011_v31, %v1298_v0 }
 0x503   :  { %v1327_v37 = vmul.f32 %v1296_v56, %v2683_v8  ;;  %v1328_v1 = vmul.f32 %v1296_v56, %v2685_v9 }
 0x504   :  { %v1300_v48 = vmul.f32 0.5, %v1299_v30 }
 0x506   :  { %v1301_v51 = vsub.f32 1.5, %v1300_v48  ;;  %1439 = vmatmul.f32.vlgmr.msrb.gmra.mxu0 %v1327_v37  ;;  %1462 = vmatmul.f32.vlgmr.msrb.gmra.mxu1 %v1328_v1 }
 0x508   :  { %v1302_v11 = vmul.f32 %v2011_v31, %v1301_v51 }
 0x50a   :  { %v1306_v36 = vsel %vm1305_vm15, %v2011_v31, %v1302_v11 }
 0x50b   :  { %v1329_v59 = vmul.f32 %v1306_v36, %v2691_v19  ;;  %v1330_v62 = vmul.f32 %v1306_v36, %v2693_v25 }
 0x50e   :  { %1442 = vmatmul.f32.gmra.mxu0 %v1329_v59  ;;  %1465 = vmatmul.f32.gmra.mxu1 %v1330_v62 }
 0x562   :  { %v1348_v54 = vpop.f32.mrf.mxu0  ;;  %v1371_v63 = vpop.f32.mrf.mxu1 }
 0x563   :  { %v1372_v8 = vadd.f32 %v1371_v63, %v1348_v54 }
 0x565   :  { %v1469_v9 = vmul.f32 %v1372_v8, %v2359_v22 }
 0x567   :  { %v1475_v47 = vsel %vm636_vm7, %v1469_v9, -inf }
 0x568   :  { %1476 = vmax.xlane.f32.xlu1 %v1475_v47  ;;  %v46_v47 = vld [vmem:[%s2877_s4] sm:$0xff] }
 0x56b   :  { %v1351_v57 = vpop.f32.mrf.mxu0  ;;  %v1374_v7 = vpop.f32.mrf.mxu1 }
 0x56c   :  { %v1375_v26 = vadd.f32 %v1374_v7, %v1351_v57  ;;  %v47_v57 = vld [vmem:[%s2877_s4 + $0x8] sm:$0xff]  ;;  %v49_v7 = vld [vmem:[%s2877_s4 + $0x18] sm:$0xff] }
 0x56e   :  { %v1470_v35 = vmul.f32 %v1375_v26, %v2359_v22  ;;  %v48_v26 = vld [vmem:[%s2877_s4 + $0x10] sm:$0xff] }
 0x570   :  { %v1478_v39 = vsel %vm636_vm7, %v1470_v35, -inf }
 0x571   :  { %1479 = vmax.xlane.f32.xlu2 %v1478_v39  ;;  %v1097_v39 = vpop.f32.mrf.mxu3 }
 0x573   :  { %v1394_v19 = vpop.f32.mrf.mxu0  ;;  %v1417_v25 = vpop.f32.mrf.mxu1 }
 0x574   :  { %v1418_v40 = vadd.f32 %v1417_v25, %v1394_v19 }
 0x576   :  { %v1471_v2 = vmul.f32 %v1418_v40, %v2365_v3 }
 0x578   :  { %v1481_v12 = vsel %vm636_vm7, %v1471_v2, -inf }
 0x579   :  { %1482 = vmax.xlane.f32.xlu0 %v1481_v12  ;;  %v1100_v25 = vpop.f32.mrf.mxu3 }
 0x57a   :  { %1584 = vmatpush.msra.mxu1 %v1100_v25 }
 0x57b   :  { %v1397_v43 = vpop.f32.mrf.mxu0  ;;  %v1420_v4 = vpop.f32.mrf.mxu1 }
 0x57c   :  { %v1421_v5 = vadd.f32 %v1420_v4, %v1397_v43  ;;  %1585 = vmatpush.msra.mxu1 %v1097_v39 }
 0x57e   :  { %v1472_v20 = vmul.f32 %v1421_v5, %v2365_v3 }
 0x580   :  { %v1484_v18 = vsel %vm636_vm7, %v1472_v20, -inf }
 0x581   :  { %1485 = vmax.xlane.f32.xlu1 %v1484_v18 }
 0x583   :  { %v1440_v22 = vpop.f32.mrf.mxu0  ;;  %v1463_v60 = vpop.f32.mrf.mxu1 }
 0x584   :  { %v1464_v28 = vadd.f32 %v1463_v60, %v1440_v22 }
 0x586   :  { %v1473_v32 = vmul.f32 %v1464_v28, %v2389_v16 }
 0x588   :  { %v1487_v23 = vsel %vm636_vm7, %v1473_v32, -inf }
 0x589   :  { %1488 = vmax.xlane.f32.xlu2 %v1487_v23 }
 0x58b   :  { %v1443_v33 = vpop.f32.mrf.mxu0  ;;  %v1466_v34 = vpop.f32.mrf.mxu1 }
 0x58c   :  { %v1467_v29 = vadd.f32 %v1466_v34, %v1443_v33 }
 0x58e   :  { %v1474_v58 = vmul.f32 %v1467_v29, %v2389_v16 }
 0x590   :  { %v1490_v38 = vsel %vm636_vm7, %v1474_v58, -inf }
 0x591   :  { %1491 = vmax.xlane.f32.xlu0 %v1490_v38 }
 0x5db   :  { %v1477_v3 = vpop.xlane.xlu1 %1476 }
 0x5dc   :  { %v1493_v41 = vsub.f32 %v1469_v9, %v1477_v3 }
 0x5de   :  { %v1499_v61 = vmul.f32 1.442695, %v1493_v41 }
 0x5e0   :  { %2012 = vpow2.f32 %v1499_v61 }
 0x5e4   :  { %v1480_v6 = vpop.xlane.xlu2 %1479 }
 0x5e5   :  { %v1494_v44 = vsub.f32 %v1470_v35, %v1480_v6  ;;  %v1026_v35 = vpop.f32.mrf.mxu2 }
 0x5e6   :  { %v2755_v27 = vpop.eup %2012 }
 0x5e7   :  { %v1511_v45 = vsel %vm636_vm7, %v2755_v27, 0.0  ;;  %v1501_v46 = vmul.f32 1.442695, %v1494_v44 }
 0x5e8   :  { %1512 = vadd.xlane.f32.xlu1 %v1511_v45 }
 0x5e9   :  { %2014 = vpow2.f32 %v1501_v46 }
 0x5ec   :  { %v1483_v53 = vpop.xlane.xlu0 %1482 }
 0x5ed   :  { %v1495_v49 = vsub.f32 %v1471_v2, %v1483_v53  ;;  %v1029_v19 = vpop.f32.mrf.mxu2  ;;  %v1103_v2 = vpop.f32.mrf.mxu3 }
 0x5ee   :  { %1561 = vmatpush.msra.mxu0 %v1029_v19 }
 0x5ef   :  { %v2759_v16 = vpop.eup %2014  ;;  %v1503_v24 = vmul.f32 1.442695, %v1495_v49 }
 0x5f0   :  { %v1514_v50 = vsel %vm636_vm7, %v2759_v16, 0.0  ;;  %1562 = vmatpush.msra.mxu0 %v1026_v35 }
 0x5f1   :  { %2016 = vpow2.f32 %v1503_v24  ;;  %1515 = vadd.xlane.f32.xlu2 %v1514_v50 }
 0x5f4   :  { %v1486_v31 = vpop.xlane.xlu1 %1485 }
 0x5f5   :  { %v1496_v55 = vsub.f32 %v1472_v20, %v1486_v31  ;;  %v1032_v40 = vpop.f32.mrf.mxu2  ;;  %v1106_v43 = vpop.f32.mrf.mxu3 }
 0x5f6   :  { %1636 = vmatpush.msrb.mxu1 %v1106_v43 }
 0x5f7   :  { %v2763_v0 = vpop.eup %2016  ;;  %v1505_v56 = vmul.f32 1.442695, %v1496_v55 }
 0x5f8   :  { %v1517_v30 = vsel %vm636_vm7, %v2763_v0, 0.0  ;;  %1637 = vmatpush.msrb.mxu1 %v1103_v2 }
 0x5f9   :  { %2018 = vpow2.f32 %v1505_v56  ;;  %1518 = vadd.xlane.f32.xlu0 %v1517_v30 }
 0x5fc   :  { %v1489_v37 = vpop.xlane.xlu2 %1488 }
 0x5fd   :  { %v1497_v1 = vsub.f32 %v1473_v32, %v1489_v37  ;;  %v1035_v12 = vpop.f32.mrf.mxu2  ;;  %v1109_v5 = vpop.f32.mrf.mxu3 }
 0x5fe   :  { %1613 = vmatpush.msrb.mxu0 %v1035_v12 }
 0x5ff   :  { %v2767_v48 = vpop.eup %2018  ;;  %v1507_v51 = vmul.f32 1.442695, %v1497_v1 }
 0x600   :  { %v1520_v11 = vsel %vm636_vm7, %v2767_v48, 0.0  ;;  %1614 = vmatpush.msrb.mxu0 %v1032_v40 }
 0x601   :  { %2020 = vpow2.f32 %v1507_v51  ;;  %1521 = vadd.xlane.f32.xlu1 %v1520_v11 }
 0x604   :  { %v1492_v36 = vpop.xlane.xlu0 %1491 }
 0x605   :  { %v1498_v59 = vsub.f32 %v1474_v58, %v1492_v36  ;;  %v1038_v4 = vpop.f32.mrf.mxu2  ;;  %v1112_v28 = vpop.f32.mrf.mxu3 }
 0x607   :  { %v2771_v62 = vpop.eup %2020  ;;  %v1509_v54 = vmul.f32 1.442695, %v1498_v59 }
 0x608   :  { %v1523_v63 = vsel %vm636_vm7, %v2771_v62, 0.0 }
 0x609   :  { %2022 = vpow2.f32 %v1509_v54  ;;  %1524 = vadd.xlane.f32.xlu2 %v1523_v63  ;;  %v2050_v54 = vld [vmem:[%s2876_s3 + $0x10] sm:$0xff]  ;;  %v2051_v63 = vld [vmem:[%s2876_s3 + $0x18] sm:$0xff] }
 0x60d   :  { %v1041_v60 = vpop.f32.mrf.mxu2 }
 0x60f   :  { %v2775_v8 = vpop.eup %2022 }
 0x610   :  { %v1526_v9 = vsel %vm636_vm7, %v2775_v8, 0.0 }
 0x611   :  { %1527 = vadd.xlane.f32.xlu0 %v1526_v9 }
 0x61a   :  { %861 = vperm.xlu1 %1935, %v46_v47  }
 0x621   :  { %866 = vperm.xlu2 %1936, %v47_v57  }
 0x622   :  { %876 = vperm.xlu1 %1935, %v49_v7  }
 0x625   :  { %871 = vperm.xlu0 %1934, %v48_v26  }
 0x65b   :  { %v1513_v20 = vpop.xlane.xlu1 %1512 }
 0x65c   :  { %2024 = vrcp.f32 %v1513_v20 }
 0x662   :  { %v2025_v18 = vpop.eup %2024 }
 0x663   :  { %v1535_v22 = vmul.f32 %v2025_v18, %v2755_v27 }
 0x664   :  { %v1516_v32 = vpop.xlane.xlu2 %1515 }
 0x665   :  { %1765 = vst.msk [vmem:[#allocation4 + $0x30] sm:$0xff] %vm636_vm7, %v1535_v22  ;;  %1907 = vmatmul.msk.f32.vlgmr.msra.gmra.mxu0 %vm636_vm7, %v1535_v22  ;;  %1909 = vmatmul.msk.f32.vlgmr.msra.gmra.mxu1 %vm636_vm7, %v1535_v22  ;;  %2026 = vrcp.f32 %v1516_v32 }
 0x666   :  { %1665 = vmatpush.msra.mxu0 %v1041_v60  ;;  %1688 = vmatpush.msra.mxu1 %v1112_v28 }
 0x668   :  { %1666 = vmatpush.msra.mxu0 %v1038_v4  ;;  %1689 = vmatpush.msra.mxu1 %v1109_v5 }
 0x66b   :  { %v2027_v23 = vpop.eup %2026 }
 0x66c   :  { %v1519_v33 = vpop.xlane.xlu0 %1518  ;;  %v1536_v34 = vmul.f32 %v2027_v23, %v2759_v16 }
 0x66d   :  { %2028 = vrcp.f32 %v1519_v33 }
 0x66e   :  { %1908 = vmatmul.msk.f32.gmra.mxu0 %vm636_vm7, %v1536_v34  ;;  %1766 = vst.msk [vmem:[#allocation4 + $0x38] sm:$0xff] %vm636_vm7, %v1536_v34  ;;  %1910 = vmatmul.msk.f32.gmra.mxu1 %vm636_vm7, %v1536_v34 }
 0x673   :  { %v2029_v29 = vpop.eup %2028 }
 0x674   :  { %v1537_v58 = vmul.f32 %v2029_v29, %v2763_v0  ;;  %v1522_v38 = vpop.xlane.xlu1 %1521 }
 0x675   :  { %2030 = vrcp.f32 %v1522_v38 }
 0x676   :  { %1767 = vst.msk [vmem:[#allocation4 + $0x40] sm:$0xff] %vm636_vm7, %v1537_v58  ;;  %1911 = vmatmul.msk.f32.vlgmr.msrb.gmra.mxu0 %vm636_vm7, %v1537_v58  ;;  %1913 = vmatmul.msk.f32.vlgmr.msrb.gmra.mxu1 %vm636_vm7, %v1537_v58 }
 0x67b   :  { %v2031_v3 = vpop.eup %2030 }
 0x67c   :  { %v1525_v41 = vpop.xlane.xlu2 %1524  ;;  %v1538_v61 = vmul.f32 %v2031_v3, %v2767_v48 }
 0x67d   :  { %2032 = vrcp.f32 %v1525_v41 }
 0x67e   :  { %1912 = vmatmul.msk.f32.gmra.mxu0 %vm636_vm7, %v1538_v61  ;;  %1768 = vst.msk [vmem:[#allocation4 + $0x48] sm:$0xff] %vm636_vm7, %v1538_v61  ;;  %1914 = vmatmul.msk.f32.gmra.mxu1 %vm636_vm7, %v1538_v61 }
 0x683   :  { %v2033_v6 = vpop.eup %2032 }
 0x684   :  { %v1539_v27 = vmul.f32 %v2033_v6, %v2771_v62  ;;  %v2808_v44 = vpop.permute.xlu2 %866  ;;  %v1528_v45 = vpop.xlane.xlu0 %1527 }
 0x685   :  { %v913_v46 = vadd.f32 %v2575_v14, %v2808_v44  ;;  %v942_v53 = vadd.f32 %v2577_v15, %v2808_v44  ;;  %2034 = vrcp.f32 %v1528_v45 }
 0x686   :  { %1769 = vst.msk [vmem:[#allocation4 + $0x50] sm:$0xff] %vm636_vm7, %v1539_v27  ;;  %1915 = vmatmul.msk.f32.vlgmr.msra.gmra.mxu0 %vm636_vm7, %v1539_v27  ;;  %1917 = vmatmul.msk.f32.vlgmr.msra.gmra.mxu1 %vm636_vm7, %v1539_v27 }
 0x687   :  { %952 = vst [vmem:[#allocation2 + $0x10] sm:$0xff] %v913_v46 }
 0x688   :  { %953 = vst [vmem:[#allocation2 + $0x18] sm:$0xff] %v942_v53 }
 0x68b   :  { %v2035_v49 = vpop.eup %2034 }
 0x68c   :  { %v2817_v16 = vpop.permute.xlu1 %861  ;;  %v1540_v24 = vmul.f32 %v2035_v49, %v2775_v8 }
 0x68d   :  { %v910_v14 = vadd.f32 %v2567_v21, %v2817_v16  ;;  %v939_v15 = vadd.f32 %v2569_v13, %v2817_v16 }
 0x68e   :  { %1916 = vmatmul.msk.f32.gmra.mxu0 %vm636_vm7, %v1540_v24  ;;  %1770 = vst.msk [vmem:[#allocation4 + $0x58] sm:$0xff] %vm636_vm7, %v1540_v24  ;;  %1918 = vmatmul.msk.f32.gmra.mxu1 %vm636_vm7, %v1540_v24 }
 0x68f   :  { %950 = vst [vmem:[#allocation2] sm:$0xff] %v910_v14  ;;  %1796 = dma.vmem_to_hbm [thread:$0]  %s1789_s17, 1536, %s1791_s19, [#allocation5], %s2106_s20, %s2106_s20, %s2107_s21  }
 0x690   :  { %951 = vst [vmem:[#allocation2 + $0x8] sm:$0xff] %v939_v15 }
 0x694   :  { %v2827_v50 = vpop.permute.xlu1 %876 }
 0x695   :  { %v919_v31 = vadd.f32 %v2591_v10, %v2827_v50  ;;  %v948_v55 = vadd.f32 %v2593_v52, %v2827_v50 }
 0x697   :  { %956 = vst [vmem:[#allocation2 + $0x30] sm:$0xff] %v919_v31  ;;  %v2833_v21 = vpop.permute.xlu0 %871 }
 0x698   :  { %957 = vst [vmem:[#allocation2 + $0x38] sm:$0xff] %v948_v55  ;;  %v916_v13 = vadd.f32 %v2583_v42, %v2833_v21  ;;  %v945_v0 = vadd.f32 %v2585_v17, %v2833_v21  ;;  %v2048_v42 = vld [vmem:[%s2876_s3] sm:$0xff]  ;;  %v2049_v17 = vld [vmem:[%s2876_s3 + $0x8] sm:$0xff]  ;;  %s2108_s3 = smov [#allocation2]  }
 0x699   :  { %s1775_s6 = sshll.u32 %s2108_s3, 4  ;;  %s1776_s6 = int_to_ptr.vmem [resolvable:$true] %s1775_s6 }
 0x69a   :  { %954 = vst [vmem:[#allocation2 + $0x20] sm:$0xff] %v916_v13 }
 0x69b   :  { %955 = vst [vmem:[#allocation2 + $0x28] sm:$0xff] %v945_v0 }
 0x6e2   :  { %v1564_v56 = vpop.f32.mrf.mxu0  ;;  %v1587_v30 = vpop.f32.mrf.mxu1 }
 0x6eb   :  { %v1567_v37 = vpop.f32.mrf.mxu0  ;;  %v1590_v1 = vpop.f32.mrf.mxu1 }
 0x6f3   :  { %v1616_v10 = vpop.f32.mrf.mxu0  ;;  %v1639_v48 = vpop.f32.mrf.mxu1 }
 0x6fb   :  { %v1619_v51 = vpop.f32.mrf.mxu0  ;;  %v1642_v52 = vpop.f32.mrf.mxu1 }
 0x703   :  { %v1668_v11 = vpop.f32.mrf.mxu0  ;;  %v1691_v36 = vpop.f32.mrf.mxu1 }
 0x70b   :  { %v1671_v59 = vpop.f32.mrf.mxu0  ;;  %v1694_v62 = vpop.f32.mrf.mxu1 }
 0x70c   :  { %1707 = vmatpush.msrb.mxu0 %v1671_v59  ;;  %1736 = vmatpush.msrb.mxu1 %v1694_v62 }
 0x70e   :  { %1708 = vmatpush.msrb.mxu0 %v1668_v11  ;;  %1737 = vmatpush.msrb.mxu1 %v1691_v36 }
 0x710   :  { %1709 = vmatpush.msrb.mxu0 %v1619_v51  ;;  %1738 = vmatpush.msrb.mxu1 %v1642_v52 }
 0x712   :  { %1710 = vmatpush.msrb.mxu0 %v1616_v10  ;;  %1739 = vmatpush.msrb.mxu1 %v1639_v48 }
 0x714   :  { %1711 = vmatpush.msrb.mxu0 %v1567_v37  ;;  %1740 = vmatpush.msrb.mxu1 %v1590_v1 }
 0x716   :  { %1712 = vmatpush.msrb.mxu0 %v1564_v56  ;;  %1741 = vmatpush.msrb.mxu1 %v1587_v30 }
 0x717   :  { %1919 = vmatmul.msk.f32.vlgmr.msrb.gmra.mxu0 %vm879_vm8, %v2048_v42  ;;  %1923 = vmatmul.msk.f32.vlgmr.msrb.gmra.mxu1 %vm879_vm8, %v2048_v42 }
 0x71f   :  { %1920 = vmatmul.msk.f32.gmra.mxu0 %vm879_vm8, %v2049_v17  ;;  %1924 = vmatmul.msk.f32.gmra.mxu1 %vm879_vm8, %v2049_v17 }
 0x727   :  { %1921 = vmatmul.msk.f32.gmra.mxu0 %vm879_vm8, %v2050_v54  ;;  %1925 = vmatmul.msk.f32.gmra.mxu1 %vm879_vm8, %v2050_v54 }
 0x72f   :  { %1922 = vmatmul.msk.f32.gmra.mxu0 %vm879_vm8, %v2051_v63  ;;  %1926 = vmatmul.msk.f32.gmra.mxu1 %vm879_vm8, %v2051_v63 }
 0x794   :  { %v1714_v8 = vpop.f32.mrf.mxu0  ;;  %v1743_v9 = vpop.f32.mrf.mxu1 }
 0x795   :  { %v1715_v47 = vadd.f32 %v1714_v8, %v2817_v16  ;;  %v1744_v57 = vadd.f32 %v1743_v9, %v2817_v16 }
 0x797   :  { %1756 = vst [vmem:[#allocation2 + $0x40] sm:$0xff] %v1715_v47 }
 0x798   :  { %1757 = vst [vmem:[#allocation2 + $0x48] sm:$0xff] %v1744_v57 }
 0x79c   :  { %v1717_v7 = vpop.f32.mrf.mxu0  ;;  %v1746_v26 = vpop.f32.mrf.mxu1 }
 0x79d   :  { %v1718_v35 = vadd.f32 %v1717_v7, %v2808_v44  ;;  %v1747_v39 = vadd.f32 %v1746_v26, %v2808_v44 }
 0x79f   :  { %1758 = vst [vmem:[#allocation2 + $0x50] sm:$0xff] %v1718_v35 }
 0x7a0   :  { %1759 = vst [vmem:[#allocation2 + $0x58] sm:$0xff] %v1747_v39 }
 0x7a4   :  { %v1720_v19 = vpop.f32.mrf.mxu0  ;;  %v1749_v25 = vpop.f32.mrf.mxu1 }
 0x7a5   :  { %v1721_v40 = vadd.f32 %v1720_v19, %v2833_v21  ;;  %v1750_v2 = vadd.f32 %v1749_v25, %v2833_v21 }
 0x7a7   :  { %1760 = vst [vmem:[#allocation2 + $0x60] sm:$0xff] %v1721_v40 }
 0x7a8   :  { %1761 = vst [vmem:[#allocation2 + $0x68] sm:$0xff] %v1750_v2 }
 0x7ac   :  { %v1723_v12 = vpop.f32.mrf.mxu0  ;;  %v1752_v43 = vpop.f32.mrf.mxu1 }
 0x7ad   :  { %v1724_v4 = vadd.f32 %v1723_v12, %v2827_v50  ;;  %v1753_v5 = vadd.f32 %v1752_v43, %v2827_v50 }
 0x7af   :  { %1762 = vst [vmem:[#allocation2 + $0x70] sm:$0xff] %v1724_v4 }
 0x7b0   :  { %1763 = vst [vmem:[#allocation2 + $0x78] sm:$0xff] %v1753_v5 }
 0x7b1   :  { %1783 = dma.vmem_to_hbm [thread:$0]  %s1776_s6, 2048, %s1778_s24, [#allocation3], %s2109_s25, %s2109_s25, %s2110_s26  }
 0x7b2   :  { %2100 = dma.done.wait [#allocation3], 2048  }
 0x7b3   :  { %2101 = vsyncadd [#allocation3], 4294965248 }
 0x7b4   :  { %2102 = dma.done.wait [#allocation5], 1536  }
 0x7b5   :  { %2103 = vsyncadd [#allocation5], 4294965760 }
 0x7b6   :  { %1805 = vsyncpa [#allocation3], 1 }
 0x7b7   :  { %1806 = vsyncpa [#allocation5], 1 }

</bundles_post_ra>
